<compile_context>
chip_gen: v7x
topology: tpu7x:2x2x1
jax: 0.10.0
libtpu: 0.0.40
codegen_flags: <defaults>
</compile_context>

<pallas_src>
import functools

import jax
import jax.numpy as jnp
from jax import lax
from jax.experimental import pallas as pl
from jax.experimental.pallas import tpu as pltpu


def _lstm_fc_kernel(T, x_ref, wih_ref, whh_ref, b_ref, wfc_ref, bfc_ref,
                    out_ref):
    """Whole LSTM recurrence + final Linear inside one kernel.

    x_ref  : (Bp, T)       lane-dense input slab (input_size == 1)
    wih_ref: (1, 4*Hp)     input->gates weights, gate order [i,f,o,g], padded
    whh_ref: (Hp, 4*Hp)    hidden->gates weights (transposed, padded), bf16
    b_ref  : (1, 4*Hp)     b_ih + b_hh (gate-padded), f32
    wfc_ref: (Hp, Cp)      fc weight (transposed, row/lane padded), f32
    bfc_ref: (1, Cp)       fc bias (lane padded)
    out_ref: (Bp, Cp)
    """
    Bp = x_ref.shape[0]
    Hp = whh_ref.shape[0]

    wih = wih_ref[...]                      # (1, 4Hp) f32
    bias = b_ref[...]                       # (1, 4Hp) f32
    whh = whh_ref[...]                      # (Hp, 4Hp) bf16, reused every step

    h = jnp.zeros((Bp, Hp), jnp.float32)
    c = jnp.zeros((Bp, Hp), jnp.float32)
    for t in range(T):
        # Hoisted input projection: independent of h/c, so the VLIW scheduler
        # can compute it off the serial critical path.
        gx_t = x_ref[:, t:t + 1] * wih + bias                    # (Bp, 4Hp) f32

        gates = gx_t + jnp.dot(h.astype(jnp.bfloat16), whh,
                               preferred_element_type=jnp.float32)  # (Bp, 4Hp)

        # Gate layout [i | f | o | g]; Hp is a multiple of 128, so every slice
        # is lane-aligned. One sigmoid over the three contiguous gates.
        sig = jax.nn.sigmoid(gates[:, :3 * Hp])
        i_g = sig[:, 0 * Hp:1 * Hp]
        f_g = sig[:, 1 * Hp:2 * Hp]
        o_g = sig[:, 2 * Hp:3 * Hp]
        g_g = jnp.tanh(gates[:, 3 * Hp:4 * Hp])

        c = f_g * c + i_g * g_g
        h = o_g * jnp.tanh(c)

    out_ref[...] = (jnp.dot(h, wfc_ref[...],
                            preferred_element_type=jnp.float32)
                    + bfc_ref[...])


def prepare_params(w_ih, w_hh, b_ih, b_hh, fc_w, fc_b):
    """One-time parameter prep: transpose, reorder gates to [i,f,o,g], pad.

    Padded gate columns get zero weights/bias, so padded hidden units stay
    exactly zero through the recurrence (i=f=o=0.5, g=0 on c=0) and the zero
    FC rows contribute nothing.  Whh is stored in bf16 for the recurrent MXU;
    everything else stays f32.
    """
    H = w_hh.shape[1]
    I = w_ih.shape[1]
    C = fc_w.shape[0]
    assert I == 1, "kernel is specialized for input_size == 1"
    Hp = ((H + 127) // 128) * 128
    Cp = ((C + 127) // 128) * 128

    # PyTorch gate block order is [i, f, g, o]; kernel wants [i, f, o, g]
    # so the three sigmoids are contiguous.
    order = (0, 1, 3, 2)

    def gate_pad_t(w, rows, dtype):
        # w: (4H, rows) -> (rows, 4*Hp), reordered gate blocks at k*Hp.
        out = jnp.zeros((rows, 4 * Hp), dtype)
        for new_g, src_g in enumerate(order):
            blk = w[src_g * H:(src_g + 1) * H, :].T.astype(dtype)   # (rows, H)
            out = out.at[:, new_g * Hp:new_g * Hp + H].set(blk)
        return out

    wih_t = gate_pad_t(w_ih, I, jnp.float32)                        # (1, 4Hp)
    whh_t = jnp.zeros((Hp, 4 * Hp), jnp.bfloat16).at[:H].set(
        gate_pad_t(w_hh, H, jnp.bfloat16))                          # (Hp, 4Hp)

    bsum = (b_ih + b_hh).astype(jnp.float32)
    b = jnp.zeros((1, 4 * Hp), jnp.float32)
    for new_g, src_g in enumerate(order):
        b = b.at[0, new_g * Hp:new_g * Hp + H].set(
            bsum[src_g * H:(src_g + 1) * H])

    wfc_t = jnp.zeros((Hp, Cp), jnp.float32).at[:H, :C].set(
        fc_w.T.astype(jnp.float32))                                 # (Hp, Cp)
    bfc = jnp.zeros((1, Cp), jnp.float32).at[0, :C].set(
        fc_b.astype(jnp.float32))                                   # (1, Cp)
    return wih_t, whh_t, b, wfc_t, bfc


@functools.partial(jax.jit, static_argnames=("num_classes",))
def lstm_model_forward(x, params, *, num_classes):
    """x: (B, T, 1) batch_first, like the PyTorch module. Returns (B, C)."""
    wih_t, whh_t, b, wfc_t, bfc = params
    B, T, I = x.shape
    assert I == 1
    Cp = wfc_t.shape[1]
    Bp = ((B + 7) // 8) * 8                        # sublane-multiple batch

    x2d = x[..., 0].astype(jnp.float32)            # (B, T) lane-dense slab
    x2d = jnp.pad(x2d, ((0, Bp - B), (0, 0)))      # (Bp, T)

    kernel = functools.partial(_lstm_fc_kernel, T)
    out_p = pl.pallas_call(
        kernel,
        out_shape=jax.ShapeDtypeStruct((Bp, Cp), jnp.float32),
        in_specs=[pl.BlockSpec(memory_space=pltpu.MemorySpace.VMEM)] * 6,
        out_specs=pl.BlockSpec(memory_space=pltpu.MemorySpace.VMEM),
    )(x2d, wih_t, whh_t, b, wfc_t, bfc)
    return out_p[:B, :num_classes]


def lstm_model_reference(x, w_ih, w_hh, b_ih, b_hh, fc_w, fc_b):
    """Pure-JAX f32 reference matching PyTorch nn.LSTM semantics."""
    B, T, I = x.shape
    H = w_hh.shape[1]
    b = b_ih + b_hh

    def step(carry, x_t):
        h, c = carry
        gates = x_t @ w_ih.T + h @ w_hh.T + b
        i_g = jax.nn.sigmoid(gates[:, 0 * H:1 * H])
        f_g = jax.nn.sigmoid(gates[:, 1 * H:2 * H])
        g_g = jnp.tanh(gates[:, 2 * H:3 * H])
        o_g = jax.nn.sigmoid(gates[:, 3 * H:4 * H])
        c_new = f_g * c + i_g * g_g
        h_new = o_g * jnp.tanh(c_new)
        return (h_new, c_new), None

    h0 = jnp.zeros((B, H), jnp.float32)
    c0 = jnp.zeros((B, H), jnp.float32)
    (h_T, _), _ = lax.scan(step, (h0, c0), jnp.transpose(x, (1, 0, 2)))
    return h_T @ fc_w.T + fc_b


if __name__ == "__main__":
    # Module hyperparameters (from Timing_Model.py)
    input_size, hidden_size, num_classes = 1, 64, 2
    batch, seq = 4, 8

    key = jax.random.PRNGKey(0)
    ks = jax.random.split(key, 8)
    k_init = 1.0 / jnp.sqrt(hidden_size)   # PyTorch default uniform init bound

    w_ih = jax.random.uniform(ks[0], (4 * hidden_size, input_size),
                              jnp.float32, -k_init, k_init)
    w_hh = jax.random.uniform(ks[1], (4 * hidden_size, hidden_size),
                              jnp.float32, -k_init, k_init)
    b_ih = jax.random.uniform(ks[2], (4 * hidden_size,),
                              jnp.float32, -k_init, k_init)
    b_hh = jax.random.uniform(ks[3], (4 * hidden_size,),
                              jnp.float32, -k_init, k_init)
    fc_w = jax.random.uniform(ks[4], (num_classes, hidden_size),
                              jnp.float32, -k_init, k_init)
    fc_b = jax.random.uniform(ks[5], (num_classes,),
                              jnp.float32, -k_init, k_init)

    x = jax.random.normal(ks[6], (batch, seq, input_size), jnp.float32)

    params = prepare_params(w_ih, w_hh, b_ih, b_hh, fc_w, fc_b)
    out = lstm_model_forward(x, params, num_classes=num_classes)
    out = jax.block_until_ready(out)

    ref = lstm_model_reference(x, w_ih, w_hh, b_ih, b_hh, fc_w, fc_b)
    ref = jax.block_until_ready(ref)

    assert out.shape == (batch, num_classes)
    # Tolerance relaxed vs. pure-f32: the recurrent matmul uses bf16 operands
    # (f32 accumulation); gate/state math and the FC remain f32.
    assert jnp.allclose(out, ref, atol=5e-3, rtol=1e-3), (out, ref)
    print("KERNEL_OK")
</pallas_src>

<mosaic_0001>
module attributes {stable_mosaic.version = 11 : i64} {
  func.func @_lstm_fc_kernel(%arg0: memref<8x8xf32, #tpu.memory_space<vmem>>, %arg1: memref<1x512xf32, #tpu.memory_space<vmem>>, %arg2: memref<128x512xbf16, #tpu.memory_space<vmem>>, %arg3: memref<1x512xf32, #tpu.memory_space<vmem>>, %arg4: memref<128x128xf32, #tpu.memory_space<vmem>>, %arg5: memref<1x128xf32, #tpu.memory_space<vmem>>, %arg6: memref<8x128xf32, #tpu.memory_space<vmem>>) attributes {dimension_semantics = [], scalar_prefetch = 0 : i64, scratch_operands = 0 : i64, tpu.core_type = #tpu.core_type<tc>} {
    %c0 = arith.constant 0 : index
    %c0_0 = arith.constant 0 : index
    %0 = vector.load %arg1[%c0, %c0_0] : memref<1x512xf32, #tpu.memory_space<vmem>>, vector<1x512xf32>
    %c0_1 = arith.constant 0 : index
    %c0_2 = arith.constant 0 : index
    %1 = vector.load %arg3[%c0_1, %c0_2] : memref<1x512xf32, #tpu.memory_space<vmem>>, vector<1x512xf32>
    %c0_3 = arith.constant 0 : index
    %c0_4 = arith.constant 0 : index
    %2 = vector.load %arg2[%c0_3, %c0_4] : memref<128x512xbf16, #tpu.memory_space<vmem>>, vector<128x512xbf16>
    %cst = arith.constant 0.000000e+00 : f32
    %3 = vector.broadcast %cst : f32 to vector<8x128xf32>
    %cst_5 = arith.constant 0.000000e+00 : f32
    %4 = vector.broadcast %cst_5 : f32 to vector<8x128xf32>
    %c0_6 = arith.constant 0 : index
    %c0_7 = arith.constant 0 : index
    %5 = vector.load %arg0[%c0_6, %c0_7] : memref<8x8xf32, #tpu.memory_space<vmem>>, vector<8x1xf32>
    %6 = vector.broadcast %5 : vector<8x1xf32> to vector<8x512xf32>
    %7 = vector.broadcast %0 : vector<1x512xf32> to vector<8x512xf32>
    %8 = arith.mulf %6, %7 : vector<8x512xf32>
    %9 = vector.broadcast %1 : vector<1x512xf32> to vector<8x512xf32>
    %10 = arith.addf %8, %9 : vector<8x512xf32>
    %11 = arith.truncf %3 : vector<8x128xf32> to vector<8x128xbf16>
    %cst_8 = arith.constant dense<0.000000e+00> : vector<8x512xf32>
    %12 = tpu.matmul %11, %2, %cst_8 {dimension_numbers = #tpu.dot_dimension_numbers<[1], [0], [0], [1], [0, 0, 1, 1], [], []>} : vector<8x128xbf16>, vector<128x512xbf16>, vector<8x512xf32> -> vector<8x512xf32>
    %13 = arith.addf %10, %12 : vector<8x512xf32>
    %14 = vector.extract_strided_slice %13 {offsets = [0, 0], sizes = [8, 384], strides = [1, 1]} : vector<8x512xf32> to vector<8x384xf32>
    %15 = arith.negf %14 : vector<8x384xf32>
    %16 = math.exp %15 : vector<8x384xf32>
    %cst_9 = arith.constant 1.000000e+00 : f32
    %17 = vector.broadcast %cst_9 : f32 to vector<8x384xf32>
    %18 = arith.addf %17, %16 : vector<8x384xf32>
    %19 = arith.divf %17, %18 : vector<8x384xf32>
    %20 = vector.extract_strided_slice %19 {offsets = [0, 0], sizes = [8, 128], strides = [1, 1]} : vector<8x384xf32> to vector<8x128xf32>
    %21 = vector.extract_strided_slice %19 {offsets = [0, 128], sizes = [8, 128], strides = [1, 1]} : vector<8x384xf32> to vector<8x128xf32>
    %22 = vector.extract_strided_slice %19 {offsets = [0, 256], sizes = [8, 128], strides = [1, 1]} : vector<8x384xf32> to vector<8x128xf32>
    %23 = vector.extract_strided_slice %13 {offsets = [0, 384], sizes = [8, 128], strides = [1, 1]} : vector<8x512xf32> to vector<8x128xf32>
    %24 = math.tanh %23 : vector<8x128xf32>
    %25 = arith.mulf %21, %4 : vector<8x128xf32>
    %26 = arith.mulf %20, %24 : vector<8x128xf32>
    %27 = arith.addf %25, %26 : vector<8x128xf32>
    %28 = math.tanh %27 : vector<8x128xf32>
    %29 = arith.mulf %22, %28 : vector<8x128xf32>
    %c0_10 = arith.constant 0 : index
    %c1 = arith.constant 1 : index
    %30 = vector.load %arg0[%c0_10, %c1] : memref<8x8xf32, #tpu.memory_space<vmem>>, vector<8x1xf32>
    %31 = vector.broadcast %30 : vector<8x1xf32> to vector<8x512xf32>
    %32 = vector.broadcast %0 : vector<1x512xf32> to vector<8x512xf32>
    %33 = arith.mulf %31, %32 : vector<8x512xf32>
    %34 = vector.broadcast %1 : vector<1x512xf32> to vector<8x512xf32>
    %35 = arith.addf %33, %34 : vector<8x512xf32>
    %36 = arith.truncf %29 : vector<8x128xf32> to vector<8x128xbf16>
    %cst_11 = arith.constant dense<0.000000e+00> : vector<8x512xf32>
    %37 = tpu.matmul %36, %2, %cst_11 {dimension_numbers = #tpu.dot_dimension_numbers<[1], [0], [0], [1], [0, 0, 1, 1], [], []>} : vector<8x128xbf16>, vector<128x512xbf16>, vector<8x512xf32> -> vector<8x512xf32>
    %38 = arith.addf %35, %37 : vector<8x512xf32>
    %39 = vector.extract_strided_slice %38 {offsets = [0, 0], sizes = [8, 384], strides = [1, 1]} : vector<8x512xf32> to vector<8x384xf32>
    %40 = arith.negf %39 : vector<8x384xf32>
    %41 = math.exp %40 : vector<8x384xf32>
    %cst_12 = arith.constant 1.000000e+00 : f32
    %42 = vector.broadcast %cst_12 : f32 to vector<8x384xf32>
    %43 = arith.addf %42, %41 : vector<8x384xf32>
    %44 = arith.divf %42, %43 : vector<8x384xf32>
    %45 = vector.extract_strided_slice %44 {offsets = [0, 0], sizes = [8, 128], strides = [1, 1]} : vector<8x384xf32> to vector<8x128xf32>
    %46 = vector.extract_strided_slice %44 {offsets = [0, 128], sizes = [8, 128], strides = [1, 1]} : vector<8x384xf32> to vector<8x128xf32>
    %47 = vector.extract_strided_slice %44 {offsets = [0, 256], sizes = [8, 128], strides = [1, 1]} : vector<8x384xf32> to vector<8x128xf32>
    %48 = vector.extract_strided_slice %38 {offsets = [0, 384], sizes = [8, 128], strides = [1, 1]} : vector<8x512xf32> to vector<8x128xf32>
    %49 = math.tanh %48 : vector<8x128xf32>
    %50 = arith.mulf %46, %27 : vector<8x128xf32>
    %51 = arith.mulf %45, %49 : vector<8x128xf32>
    %52 = arith.addf %50, %51 : vector<8x128xf32>
    %53 = math.tanh %52 : vector<8x128xf32>
    %54 = arith.mulf %47, %53 : vector<8x128xf32>
    %c0_13 = arith.constant 0 : index
    %c2 = arith.constant 2 : index
    %55 = vector.load %arg0[%c0_13, %c2] : memref<8x8xf32, #tpu.memory_space<vmem>>, vector<8x1xf32>
    %56 = vector.broadcast %55 : vector<8x1xf32> to vector<8x512xf32>
    %57 = vector.broadcast %0 : vector<1x512xf32> to vector<8x512xf32>
    %58 = arith.mulf %56, %57 : vector<8x512xf32>
    %59 = vector.broadcast %1 : vector<1x512xf32> to vector<8x512xf32>
    %60 = arith.addf %58, %59 : vector<8x512xf32>
    %61 = arith.truncf %54 : vector<8x128xf32> to vector<8x128xbf16>
    %cst_14 = arith.constant dense<0.000000e+00> : vector<8x512xf32>
    %62 = tpu.matmul %61, %2, %cst_14 {dimension_numbers = #tpu.dot_dimension_numbers<[1], [0], [0], [1], [0, 0, 1, 1], [], []>} : vector<8x128xbf16>, vector<128x512xbf16>, vector<8x512xf32> -> vector<8x512xf32>
    %63 = arith.addf %60, %62 : vector<8x512xf32>
    %64 = vector.extract_strided_slice %63 {offsets = [0, 0], sizes = [8, 384], strides = [1, 1]} : vector<8x512xf32> to vector<8x384xf32>
    %65 = arith.negf %64 : vector<8x384xf32>
    %66 = math.exp %65 : vector<8x384xf32>
    %cst_15 = arith.constant 1.000000e+00 : f32
    %67 = vector.broadcast %cst_15 : f32 to vector<8x384xf32>
    %68 = arith.addf %67, %66 : vector<8x384xf32>
    %69 = arith.divf %67, %68 : vector<8x384xf32>
    %70 = vector.extract_strided_slice %69 {offsets = [0, 0], sizes = [8, 128], strides = [1, 1]} : vector<8x384xf32> to vector<8x128xf32>
    %71 = vector.extract_strided_slice %69 {offsets = [0, 128], sizes = [8, 128], strides = [1, 1]} : vector<8x384xf32> to vector<8x128xf32>
    %72 = vector.extract_strided_slice %69 {offsets = [0, 256], sizes = [8, 128], strides = [1, 1]} : vector<8x384xf32> to vector<8x128xf32>
    %73 = vector.extract_strided_slice %63 {offsets = [0, 384], sizes = [8, 128], strides = [1, 1]} : vector<8x512xf32> to vector<8x128xf32>
    %74 = math.tanh %73 : vector<8x128xf32>
    %75 = arith.mulf %71, %52 : vector<8x128xf32>
    %76 = arith.mulf %70, %74 : vector<8x128xf32>
    %77 = arith.addf %75, %76 : vector<8x128xf32>
    %78 = math.tanh %77 : vector<8x128xf32>
    %79 = arith.mulf %72, %78 : vector<8x128xf32>
    %c0_16 = arith.constant 0 : index
    %c3 = arith.constant 3 : index
    %80 = vector.load %arg0[%c0_16, %c3] : memref<8x8xf32, #tpu.memory_space<vmem>>, vector<8x1xf32>
    %81 = vector.broadcast %80 : vector<8x1xf32> to vector<8x512xf32>
    %82 = vector.broadcast %0 : vector<1x512xf32> to vector<8x512xf32>
    %83 = arith.mulf %81, %82 : vector<8x512xf32>
    %84 = vector.broadcast %1 : vector<1x512xf32> to vector<8x512xf32>
    %85 = arith.addf %83, %84 : vector<8x512xf32>
    %86 = arith.truncf %79 : vector<8x128xf32> to vector<8x128xbf16>
    %cst_17 = arith.constant dense<0.000000e+00> : vector<8x512xf32>
    %87 = tpu.matmul %86, %2, %cst_17 {dimension_numbers = #tpu.dot_dimension_numbers<[1], [0], [0], [1], [0, 0, 1, 1], [], []>} : vector<8x128xbf16>, vector<128x512xbf16>, vector<8x512xf32> -> vector<8x512xf32>
    %88 = arith.addf %85, %87 : vector<8x512xf32>
    %89 = vector.extract_strided_slice %88 {offsets = [0, 0], sizes = [8, 384], strides = [1, 1]} : vector<8x512xf32> to vector<8x384xf32>
    %90 = arith.negf %89 : vector<8x384xf32>
    %91 = math.exp %90 : vector<8x384xf32>
    %cst_18 = arith.constant 1.000000e+00 : f32
    %92 = vector.broadcast %cst_18 : f32 to vector<8x384xf32>
    %93 = arith.addf %92, %91 : vector<8x384xf32>
    %94 = arith.divf %92, %93 : vector<8x384xf32>
    %95 = vector.extract_strided_slice %94 {offsets = [0, 0], sizes = [8, 128], strides = [1, 1]} : vector<8x384xf32> to vector<8x128xf32>
    %96 = vector.extract_strided_slice %94 {offsets = [0, 128], sizes = [8, 128], strides = [1, 1]} : vector<8x384xf32> to vector<8x128xf32>
    %97 = vector.extract_strided_slice %94 {offsets = [0, 256], sizes = [8, 128], strides = [1, 1]} : vector<8x384xf32> to vector<8x128xf32>
    %98 = vector.extract_strided_slice %88 {offsets = [0, 384], sizes = [8, 128], strides = [1, 1]} : vector<8x512xf32> to vector<8x128xf32>
    %99 = math.tanh %98 : vector<8x128xf32>
    %100 = arith.mulf %96, %77 : vector<8x128xf32>
    %101 = arith.mulf %95, %99 : vector<8x128xf32>
    %102 = arith.addf %100, %101 : vector<8x128xf32>
    %103 = math.tanh %102 : vector<8x128xf32>
    %104 = arith.mulf %97, %103 : vector<8x128xf32>
    %c0_19 = arith.constant 0 : index
    %c4 = arith.constant 4 : index
    %105 = vector.load %arg0[%c0_19, %c4] : memref<8x8xf32, #tpu.memory_space<vmem>>, vector<8x1xf32>
    %106 = vector.broadcast %105 : vector<8x1xf32> to vector<8x512xf32>
    %107 = vector.broadcast %0 : vector<1x512xf32> to vector<8x512xf32>
    %108 = arith.mulf %106, %107 : vector<8x512xf32>
    %109 = vector.broadcast %1 : vector<1x512xf32> to vector<8x512xf32>
    %110 = arith.addf %108, %109 : vector<8x512xf32>
    %111 = arith.truncf %104 : vector<8x128xf32> to vector<8x128xbf16>
    %cst_20 = arith.constant dense<0.000000e+00> : vector<8x512xf32>
    %112 = tpu.matmul %111, %2, %cst_20 {dimension_numbers = #tpu.dot_dimension_numbers<[1], [0], [0], [1], [0, 0, 1, 1], [], []>} : vector<8x128xbf16>, vector<128x512xbf16>, vector<8x512xf32> -> vector<8x512xf32>
    %113 = arith.addf %110, %112 : vector<8x512xf32>
    %114 = vector.extract_strided_slice %113 {offsets = [0, 0], sizes = [8, 384], strides = [1, 1]} : vector<8x512xf32> to vector<8x384xf32>
    %115 = arith.negf %114 : vector<8x384xf32>
    %116 = math.exp %115 : vector<8x384xf32>
    %cst_21 = arith.constant 1.000000e+00 : f32
    %117 = vector.broadcast %cst_21 : f32 to vector<8x384xf32>
    %118 = arith.addf %117, %116 : vector<8x384xf32>
    %119 = arith.divf %117, %118 : vector<8x384xf32>
    %120 = vector.extract_strided_slice %119 {offsets = [0, 0], sizes = [8, 128], strides = [1, 1]} : vector<8x384xf32> to vector<8x128xf32>
    %121 = vector.extract_strided_slice %119 {offsets = [0, 128], sizes = [8, 128], strides = [1, 1]} : vector<8x384xf32> to vector<8x128xf32>
    %122 = vector.extract_strided_slice %119 {offsets = [0, 256], sizes = [8, 128], strides = [1, 1]} : vector<8x384xf32> to vector<8x128xf32>
    %123 = vector.extract_strided_slice %113 {offsets = [0, 384], sizes = [8, 128], strides = [1, 1]} : vector<8x512xf32> to vector<8x128xf32>
    %124 = math.tanh %123 : vector<8x128xf32>
    %125 = arith.mulf %121, %102 : vector<8x128xf32>
    %126 = arith.mulf %120, %124 : vector<8x128xf32>
    %127 = arith.addf %125, %126 : vector<8x128xf32>
    %128 = math.tanh %127 : vector<8x128xf32>
    %129 = arith.mulf %122, %128 : vector<8x128xf32>
    %c0_22 = arith.constant 0 : index
    %c5 = arith.constant 5 : index
    %130 = vector.load %arg0[%c0_22, %c5] : memref<8x8xf32, #tpu.memory_space<vmem>>, vector<8x1xf32>
    %131 = vector.broadcast %130 : vector<8x1xf32> to vector<8x512xf32>
    %132 = vector.broadcast %0 : vector<1x512xf32> to vector<8x512xf32>
    %133 = arith.mulf %131, %132 : vector<8x512xf32>
    %134 = vector.broadcast %1 : vector<1x512xf32> to vector<8x512xf32>
    %135 = arith.addf %133, %134 : vector<8x512xf32>
    %136 = arith.truncf %129 : vector<8x128xf32> to vector<8x128xbf16>
    %cst_23 = arith.constant dense<0.000000e+00> : vector<8x512xf32>
    %137 = tpu.matmul %136, %2, %cst_23 {dimension_numbers = #tpu.dot_dimension_numbers<[1], [0], [0], [1], [0, 0, 1, 1], [], []>} : vector<8x128xbf16>, vector<128x512xbf16>, vector<8x512xf32> -> vector<8x512xf32>
    %138 = arith.addf %135, %137 : vector<8x512xf32>
    %139 = vector.extract_strided_slice %138 {offsets = [0, 0], sizes = [8, 384], strides = [1, 1]} : vector<8x512xf32> to vector<8x384xf32>
    %140 = arith.negf %139 : vector<8x384xf32>
    %141 = math.exp %140 : vector<8x384xf32>
    %cst_24 = arith.constant 1.000000e+00 : f32
    %142 = vector.broadcast %cst_24 : f32 to vector<8x384xf32>
    %143 = arith.addf %142, %141 : vector<8x384xf32>
    %144 = arith.divf %142, %143 : vector<8x384xf32>
    %145 = vector.extract_strided_slice %144 {offsets = [0, 0], sizes = [8, 128], strides = [1, 1]} : vector<8x384xf32> to vector<8x128xf32>
    %146 = vector.extract_strided_slice %144 {offsets = [0, 128], sizes = [8, 128], strides = [1, 1]} : vector<8x384xf32> to vector<8x128xf32>
    %147 = vector.extract_strided_slice %144 {offsets = [0, 256], sizes = [8, 128], strides = [1, 1]} : vector<8x384xf32> to vector<8x128xf32>
    %148 = vector.extract_strided_slice %138 {offsets = [0, 384], sizes = [8, 128], strides = [1, 1]} : vector<8x512xf32> to vector<8x128xf32>
    %149 = math.tanh %148 : vector<8x128xf32>
    %150 = arith.mulf %146, %127 : vector<8x128xf32>
    %151 = arith.mulf %145, %149 : vector<8x128xf32>
    %152 = arith.addf %150, %151 : vector<8x128xf32>
    %153 = math.tanh %152 : vector<8x128xf32>
    %154 = arith.mulf %147, %153 : vector<8x128xf32>
    %c0_25 = arith.constant 0 : index
    %c6 = arith.constant 6 : index
    %155 = vector.load %arg0[%c0_25, %c6] : memref<8x8xf32, #tpu.memory_space<vmem>>, vector<8x1xf32>
    %156 = vector.broadcast %155 : vector<8x1xf32> to vector<8x512xf32>
    %157 = vector.broadcast %0 : vector<1x512xf32> to vector<8x512xf32>
    %158 = arith.mulf %156, %157 : vector<8x512xf32>
    %159 = vector.broadcast %1 : vector<1x512xf32> to vector<8x512xf32>
    %160 = arith.addf %158, %159 : vector<8x512xf32>
    %161 = arith.truncf %154 : vector<8x128xf32> to vector<8x128xbf16>
    %cst_26 = arith.constant dense<0.000000e+00> : vector<8x512xf32>
    %162 = tpu.matmul %161, %2, %cst_26 {dimension_numbers = #tpu.dot_dimension_numbers<[1], [0], [0], [1], [0, 0, 1, 1], [], []>} : vector<8x128xbf16>, vector<128x512xbf16>, vector<8x512xf32> -> vector<8x512xf32>
    %163 = arith.addf %160, %162 : vector<8x512xf32>
    %164 = vector.extract_strided_slice %163 {offsets = [0, 0], sizes = [8, 384], strides = [1, 1]} : vector<8x512xf32> to vector<8x384xf32>
    %165 = arith.negf %164 : vector<8x384xf32>
    %166 = math.exp %165 : vector<8x384xf32>
    %cst_27 = arith.constant 1.000000e+00 : f32
    %167 = vector.broadcast %cst_27 : f32 to vector<8x384xf32>
    %168 = arith.addf %167, %166 : vector<8x384xf32>
    %169 = arith.divf %167, %168 : vector<8x384xf32>
    %170 = vector.extract_strided_slice %169 {offsets = [0, 0], sizes = [8, 128], strides = [1, 1]} : vector<8x384xf32> to vector<8x128xf32>
    %171 = vector.extract_strided_slice %169 {offsets = [0, 128], sizes = [8, 128], strides = [1, 1]} : vector<8x384xf32> to vector<8x128xf32>
    %172 = vector.extract_strided_slice %169 {offsets = [0, 256], sizes = [8, 128], strides = [1, 1]} : vector<8x384xf32> to vector<8x128xf32>
    %173 = vector.extract_strided_slice %163 {offsets = [0, 384], sizes = [8, 128], strides = [1, 1]} : vector<8x512xf32> to vector<8x128xf32>
    %174 = math.tanh %173 : vector<8x128xf32>
    %175 = arith.mulf %171, %152 : vector<8x128xf32>
    %176 = arith.mulf %170, %174 : vector<8x128xf32>
    %177 = arith.addf %175, %176 : vector<8x128xf32>
    %178 = math.tanh %177 : vector<8x128xf32>
    %179 = arith.mulf %172, %178 : vector<8x128xf32>
    %c0_28 = arith.constant 0 : index
    %c7 = arith.constant 7 : index
    %180 = vector.load %arg0[%c0_28, %c7] : memref<8x8xf32, #tpu.memory_space<vmem>>, vector<8x1xf32>
    %181 = vector.broadcast %180 : vector<8x1xf32> to vector<8x512xf32>
    %182 = vector.broadcast %0 : vector<1x512xf32> to vector<8x512xf32>
    %183 = arith.mulf %181, %182 : vector<8x512xf32>
    %184 = vector.broadcast %1 : vector<1x512xf32> to vector<8x512xf32>
    %185 = arith.addf %183, %184 : vector<8x512xf32>
    %186 = arith.truncf %179 : vector<8x128xf32> to vector<8x128xbf16>
    %cst_29 = arith.constant dense<0.000000e+00> : vector<8x512xf32>
    %187 = tpu.matmul %186, %2, %cst_29 {dimension_numbers = #tpu.dot_dimension_numbers<[1], [0], [0], [1], [0, 0, 1, 1], [], []>} : vector<8x128xbf16>, vector<128x512xbf16>, vector<8x512xf32> -> vector<8x512xf32>
    %188 = arith.addf %185, %187 : vector<8x512xf32>
    %189 = vector.extract_strided_slice %188 {offsets = [0, 0], sizes = [8, 384], strides = [1, 1]} : vector<8x512xf32> to vector<8x384xf32>
    %190 = arith.negf %189 : vector<8x384xf32>
    %191 = math.exp %190 : vector<8x384xf32>
    %cst_30 = arith.constant 1.000000e+00 : f32
    %192 = vector.broadcast %cst_30 : f32 to vector<8x384xf32>
    %193 = arith.addf %192, %191 : vector<8x384xf32>
    %194 = arith.divf %192, %193 : vector<8x384xf32>
    %195 = vector.extract_strided_slice %194 {offsets = [0, 0], sizes = [8, 128], strides = [1, 1]} : vector<8x384xf32> to vector<8x128xf32>
    %196 = vector.extract_strided_slice %194 {offsets = [0, 128], sizes = [8, 128], strides = [1, 1]} : vector<8x384xf32> to vector<8x128xf32>
    %197 = vector.extract_strided_slice %194 {offsets = [0, 256], sizes = [8, 128], strides = [1, 1]} : vector<8x384xf32> to vector<8x128xf32>
    %198 = vector.extract_strided_slice %188 {offsets = [0, 384], sizes = [8, 128], strides = [1, 1]} : vector<8x512xf32> to vector<8x128xf32>
    %199 = math.tanh %198 : vector<8x128xf32>
    %200 = arith.mulf %196, %177 : vector<8x128xf32>
    %201 = arith.mulf %195, %199 : vector<8x128xf32>
    %202 = arith.addf %200, %201 : vector<8x128xf32>
    %203 = math.tanh %202 : vector<8x128xf32>
    %204 = arith.mulf %197, %203 : vector<8x128xf32>
    %c0_31 = arith.constant 0 : index
    %c0_32 = arith.constant 0 : index
    %205 = vector.load %arg4[%c0_31, %c0_32] : memref<128x128xf32, #tpu.memory_space<vmem>>, vector<128x128xf32>
    %cst_33 = arith.constant dense<0.000000e+00> : vector<8x128xf32>
    %206 = tpu.matmul %204, %205, %cst_33 {dimension_numbers = #tpu.dot_dimension_numbers<[1], [0], [0], [1], [0, 0, 1, 1], [], []>} : vector<8x128xf32>, vector<128x128xf32>, vector<8x128xf32> -> vector<8x128xf32>
    %c0_34 = arith.constant 0 : index
    %c0_35 = arith.constant 0 : index
    %207 = vector.load %arg5[%c0_34, %c0_35] : memref<1x128xf32, #tpu.memory_space<vmem>>, vector<1x128xf32>
    %208 = vector.broadcast %207 : vector<1x128xf32> to vector<8x128xf32>
    %209 = arith.addf %206, %208 : vector<8x128xf32>
    %c0_36 = arith.constant 0 : index
    %c0_37 = arith.constant 0 : index
    %210 = vector.load %arg6[%c0_36, %c0_37] : memref<8x128xf32, #tpu.memory_space<vmem>>, vector<8x128xf32>
    tpu.vector_store %arg6[%c0_36, %c0_37], %209 {strides = array<i32>} : memref<8x128xf32, #tpu.memory_space<vmem>>, vector<8x128xf32>,
    return
  }
}

</mosaic_0001>

<bundles_post_ra>
// kernel: lstm_model_forward.1
= control target key start
LH: loop header
LB: loop body
LE: loop exit
PB: predicated region body
PF: predicated region fallthrough
CT: control target
= control target key end

     0   :  { %11 = vsyncpa [#allocation3], 0  ;;  %s2364_s0 = inlined_call_operand.vmem [shape: f32[8,8], index: 0, kind: input, shape index: {}]   ;;  %s2365_s1 = inlined_call_operand.vmem [shape: f32[1,512], index: 1, kind: input, shape index: {}]   ;;  %s2366_s2 = inlined_call_operand.hbm [shape: bf16[128,512], index: 2, kind: input, shape index: {}]   ;;  %s2367_s3 = inlined_call_operand.vmem [shape: f32[1,512], index: 3, kind: input, shape index: {}]   ;;  %s2368_s4 = inlined_call_operand.hbm [shape: f32[128,128], index: 4, kind: input, shape index: {}]   ;;  %s2369_s5 = inlined_call_operand.vmem [shape: f32[1,128], index: 5, kind: input, shape index: {}]   ;;  %s2370_s6 = inlined_call_operand.vmem [shape: f32[8,128], index: 6, kind: output, shape index: {}]  }
   0x1   :  { %12 = vsyncpa [#allocation5], 0  ;;  %s1789_s21 = smov [#allocation2]   ;;  %s1741_s25 = scalar_lea.hbm %s2366_s2, 4096 }
   0x2   :  { %s22_s22 = sshll.u32 %s1789_s21, 4  ;;  %p1742_p0 = scmp.ne.s32.totalorder %s2366_s2, %s1741_s25  ;;  %s23_s22 = int_to_ptr.vmem [resolvable:$true] %s22_s22 }
   0x3   :  { %p1745_p1 = scmp.lt.u32.totalorder %s1741_s25, %s2366_s2 }
   0x5   :  { %p1747_p2 = pnand %p1745_p1, %p1742_p0 }
   0x7   :  { %1750 = shalt.err (!%p1747_p2)
}
   0x8   :  { %s1751_s30 = scalar_lea.vmem %s23_s22, 4096  ;;  %p1756_p4 = scmp.lt.s32.totalorder %s23_s22, %s23_s22 }
   0x9   :  { %p1752_p3 = scmp.ne.s32.totalorder %s23_s22, %s1751_s30  ;;  %p1757_p5 = scmp.lt.s32.totalorder %s1751_s30, %s1751_s30 }
   0xb   :  { %p1758_p6 = por %p1757_p5, %p1756_p4 }
   0xd   :  { %p1759_p7 = pnand %p1758_p6, %p1752_p3 }
   0xf   :  { %1762 = shalt.err (!%p1759_p7)
}
  0x10   :  { %s1790_s7 = smov 256   ;;  %s1791_s8 = smov 16  }
  0x11   :  { %28 = dma.hbm_to_vmem [thread:$0]  %s2366_s2, 4096, %s23_s22, [#allocation3], %s1790_s7, %s1790_s7, %s1791_s8  }
  0x12   :  { %s1792_s11 = smov [#allocation4]   ;;  %s1763_s15 = scalar_lea.hbm %s2368_s4, 2048 }
  0x13   :  { %s36_s12 = sshll.u32 %s1792_s11, 4  ;;  %p1764_p8 = scmp.ne.s32.totalorder %s2368_s4, %s1763_s15  ;;  %s37_s12 = int_to_ptr.vmem [resolvable:$true] %s36_s12 }
  0x14   :  { %p1767_p9 = scmp.lt.u32.totalorder %s1763_s15, %s2368_s4 }
  0x16   :  { %p1769_p10 = pnand %p1767_p9, %p1764_p8 }
  0x18   :  { %1772 = shalt.err (!%p1769_p10)
}
  0x19   :  { %s1773_s20 = scalar_lea.vmem %s37_s12, 2048  ;;  %p1778_p12 = scmp.lt.s32.totalorder %s37_s12, %s37_s12 }
  0x1a   :  { %p1774_p11 = scmp.ne.s32.totalorder %s37_s12, %s1773_s20  ;;  %p1779_p13 = scmp.lt.s32.totalorder %s1773_s20, %s1773_s20 }
  0x1c   :  { %p1780_p0 = por %p1779_p13, %p1778_p12 }
  0x1e   :  { %p1781_p1 = pnand %p1780_p0, %p1774_p11 }
  0x20   :  { %1784 = shalt.err (!%p1781_p1)
}
  0x21   :  { %s1793_s2 = smov 128   ;;  %s1794_s21 = smov 8  }
  0x22   :  { %42 = dma.hbm_to_vmem [thread:$0]  %s2368_s4, 2048, %s37_s12, [#allocation5], %s1793_s2, %s1793_s2, %s1794_s21  }
  0x23   :  { %1785 = dma.done.wait [#allocation3], 4096  }
  0x24   :  { %1786 = vsyncadd [#allocation3], 4294963200 }
  0x25   :  { %1787 = dma.done.wait [#allocation5], 2048  }
  0x26   :  { %1788 = vsyncadd [#allocation5], 4294965248  ;;  %v2371_v0 = vmov 0   ;;  %v1868_v1 = vld [vmem:[#allocation2 + $0x4] ss:$16 sps:$4 sm:$0xff]   ;;  %v1796_v34 = vmov 1   ;;  %v93_v35 = vlaneseq }
  0x27   :  { %334 = vmatprep.mubr.bf16.mxu0 %v2371_v0  ;;  %375 = vmatprep.mubr.bf16.mxu1 %v2371_v0  ;;  %v1870_v2 = vld [vmem:[#allocation2 + $0xc] ss:$16 sps:$4 sm:$0xff]   ;;  %v1873_v3 = vld [vmem:[#allocation2] ss:$16 sps:$4 sm:$0xff]   ;;  %v1875_v4 = vld [vmem:[#allocation2 + $0x8] ss:$16 sps:$4 sm:$0xff]  }
  0x28   :  { %1523 = vset.pattern.permute.xlu0 %v2371_v0  ;;  %302 = vmatprep.subr.bf16.mxu0 %v1868_v1  ;;  %v1878_v5 = vld [vmem:[#allocation2 + $0x24] ss:$16 sps:$4 sm:$0xff]   ;;  %v1882_v6 = vld [vmem:[#allocation2 + $0x2c] ss:$16 sps:$4 sm:$0xff]   ;;  %v1884_v7 = vld [vmem:[#allocation2 + $0x20] ss:$16 sps:$4 sm:$0xff]  }
  0x29   :  { %343 = vmatprep.subr.bf16.mxu1 %v1870_v2  ;;  %303 = vmatpush1.bf16.msra.mxu0 %v1873_v3  ;;  %v1887_v8 = vld [vmem:[#allocation2 + $0x28] ss:$16 sps:$4 sm:$0xff]   ;;  %v1890_v9 = vld [vmem:[#allocation2 + $0x44] ss:$16 sps:$4 sm:$0xff]   ;;  %v1892_v10 = vld [vmem:[#allocation2 + $0x4c] ss:$16 sps:$4 sm:$0xff]  }
  0x2a   :  { %344 = vmatpush1.bf16.msra.mxu1 %v1875_v4  ;;  %304 = vmatprep.subr.bf16.mxu0 %v1878_v5  ;;  %v1894_v11 = vld [vmem:[#allocation2 + $0x40] ss:$16 sps:$4 sm:$0xff]   ;;  %v1896_v12 = vld [vmem:[#allocation2 + $0x48] ss:$16 sps:$4 sm:$0xff]   ;;  %v1900_v13 = vld [vmem:[#allocation2 + $0x64] ss:$16 sps:$4 sm:$0xff]  }
  0x2b   :  { %345 = vmatprep.subr.bf16.mxu1 %v1882_v6  ;;  %v1904_v14 = vld [vmem:[#allocation2 + $0x6c] ss:$16 sps:$4 sm:$0xff]   ;;  %v1906_v15 = vld [vmem:[#allocation2 + $0x60] ss:$16 sps:$4 sm:$0xff]   ;;  %v1910_v16 = vld [vmem:[#allocation2 + $0x68] ss:$16 sps:$4 sm:$0xff]  }
  0x2c   :  { %v1912_v17 = vld [vmem:[#allocation2 + $0x84] ss:$16 sps:$4 sm:$0xff]   ;;  %v1916_v18 = vld [vmem:[#allocation2 + $0x8c] ss:$16 sps:$4 sm:$0xff]   ;;  %v1918_v19 = vld [vmem:[#allocation2 + $0x80] ss:$16 sps:$4 sm:$0xff]  }
  0x2d   :  { %305 = vmatpush1.bf16.msra.mxu0 %v1884_v7  ;;  %v1920_v20 = vld [vmem:[#allocation2 + $0x88] ss:$16 sps:$4 sm:$0xff]   ;;  %v1924_v21 = vld [vmem:[#allocation2 + $0xa4] ss:$16 sps:$4 sm:$0xff]   ;;  %v1928_v22 = vld [vmem:[#allocation2 + $0xac] ss:$16 sps:$4 sm:$0xff]  }
  0x2e   :  { %346 = vmatpush1.bf16.msra.mxu1 %v1887_v8  ;;  %306 = vmatprep.subr.bf16.mxu0 %v1890_v9  ;;  %v1932_v23 = vld [vmem:[#allocation2 + $0xa0] ss:$16 sps:$4 sm:$0xff]   ;;  %v1934_v24 = vld [vmem:[#allocation2 + $0xa8] ss:$16 sps:$4 sm:$0xff]   ;;  %v1938_v25 = vld [vmem:[#allocation2 + $0xc4] ss:$16 sps:$4 sm:$0xff]  }
  0x2f   :  { %347 = vmatprep.subr.bf16.mxu1 %v1892_v10  ;;  %v1940_v26 = vld [vmem:[#allocation2 + $0xcc] ss:$16 sps:$4 sm:$0xff]   ;;  %v1945_v27 = vld [vmem:[%s2364_s0] sm:$0xff]  ;;  %v1952_v29 = vld [vmem:[#allocation2 + $0xc8] ss:$16 sps:$4 sm:$0xff]   ;;  %v94_v36 = vshrl.u32 %v93_v35, 7 }
  0x30   :  { %89 = vperm.xlu0 %1523, %v1945_v27   ;;  %v1950_v28 = vld [vmem:[#allocation2 + $0xc0] ss:$16 sps:$4 sm:$0xff]   ;;  %v1956_v30 = vld [vmem:[#allocation2 + $0xe4] ss:$16 sps:$4 sm:$0xff]   ;;  %v1958_v31 = vld [vmem:[#allocation2 + $0xec] ss:$16 sps:$4 sm:$0xff]  }
  0x31   :  { %307 = vmatpush1.bf16.msra.mxu0 %v1894_v11  ;;  %v1962_v32 = vld [vmem:[#allocation2 + $0xe0] ss:$16 sps:$4 sm:$0xff]   ;;  %v1964_v33 = vld [vmem:[#allocation2 + $0xe8] ss:$16 sps:$4 sm:$0xff]   ;;  %v95_v37 = vsub.s32 0, %v94_v36  ;;  %v99_v39 = vsub.s32 1, %v94_v36 }
  0x32   :  { %348 = vmatpush1.bf16.msra.mxu1 %v1896_v12  ;;  %308 = vmatprep.subr.bf16.mxu0 %v1900_v13  ;;  %v52_v38 = vld [vmem:[%s2365_s1] sm:$0xf]  ;;  %v103_v46 = vsub.s32 2, %v94_v36  ;;  %v107_v49 = vsub.s32 3, %v94_v36  ;;  %vm1804_vm0 = vmmov 0  }
  0x33   :  { %349 = vmatprep.subr.bf16.mxu1 %v1904_v14  ;;  %v2012_v40 = vrot.slane %v52_v38, %v95_v37  ;;  %v53_v42 = vld [vmem:[%s2367_s3] sm:$0xf]  ;;  %v2017_v43 = vrot.slane %v52_v38, %v99_v39 }
  0x34   :  { %1524 = vset.pattern.permute.xlu0 %v1796_v34  ;;  %v2020_v45 = vrot.slane %v53_v42, %v95_v37  ;;  %v2023_v48 = vrot.slane %v53_v42, %v99_v39  ;;  %v2026_v51 = vrot.slane %v52_v38, %v103_v46  ;;  %v2029_v55 = vrot.slane %v52_v38, %v107_v49 }
  0x35   :  { %309 = vmatpush1.bf16.msra.mxu0 %v1906_v15  ;;  %413 = vperm.xlu0 %1524, %v1945_v27   ;;  %v2032_v58 = vrot.slane %v53_v42, %v103_v46 }
  0x36   :  { %350 = vmatpush1.bf16.msra.mxu1 %v1910_v16  ;;  %310 = vmatprep.subr.bf16.mxu0 %v1912_v17  ;;  %2375 = vst [vmem:[#allocation8_spill] sm:$0xff] %v2026_v51 }
  0x37   :  { %351 = vmatprep.subr.bf16.mxu1 %v1916_v18 }
  0x39   :  { %311 = vmatpush1.bf16.msra.mxu0 %v1918_v19 }
  0x3a   :  { %352 = vmatpush1.bf16.msra.mxu1 %v1920_v20  ;;  %312 = vmatprep.subr.bf16.mxu0 %v1924_v21 }
  0x3b   :  { %353 = vmatprep.subr.bf16.mxu1 %v1928_v22 }
  0x3d   :  { %313 = vmatpush1.bf16.msra.mxu0 %v1932_v23 }
  0x3e   :  { %354 = vmatpush1.bf16.msra.mxu1 %v1934_v24  ;;  %314 = vmatprep.subr.bf16.mxu0 %v1938_v25 }
  0x3f   :  { %355 = vmatprep.subr.bf16.mxu1 %v1940_v26 }
  0x41   :  { %315 = vmatpush1.bf16.msra.mxu0 %v1950_v28 }
  0x42   :  { %356 = vmatpush1.bf16.msra.mxu1 %v1952_v29  ;;  %316 = vmatprep.subr.bf16.mxu0 %v1956_v30 }
  0x43   :  { %357 = vmatprep.subr.bf16.mxu1 %v1958_v31 }
  0x45   :  { %317 = vmatpush1.bf16.msra.mxu0 %v1962_v32 }
  0x46   :  { %358 = vmatpush1.bf16.msra.mxu1 %v1964_v33  ;;  %425 = vmatprep.subr.bf16.mxu0 %v1868_v1 }
  0x47   :  { %466 = vmatprep.subr.bf16.mxu1 %v1870_v2 }
  0x48   :  { %335 = vmatmul.mubr.bf16.vlgmr.msra.gmra.mrb[0].mxu0 %v2371_v0 }
  0x49   :  { %376 = vmatmul.mubr.bf16.vlgmr.msra.gmra.mrb[0].mxu1 %v2371_v0  ;;  %426 = vmatpush1.bf16.msra.mxu0 %v1873_v3 }
  0x4a   :  { %467 = vmatpush1.bf16.msra.mxu1 %v1875_v4  ;;  %427 = vmatprep.subr.bf16.mxu0 %v1878_v5 }
  0x4b   :  { %468 = vmatprep.subr.bf16.mxu1 %v1882_v6  ;;  %457 = vmatprep.mubr.bf16.mxu0 %v2371_v0 }
  0x4c   :  { %498 = vmatprep.mubr.bf16.mxu1 %v2371_v0 }
  0x4d   :  { %428 = vmatpush1.bf16.msra.mxu0 %v1884_v7 }
  0x4e   :  { %469 = vmatpush1.bf16.msra.mxu1 %v1887_v8  ;;  %429 = vmatprep.subr.bf16.mxu0 %v1890_v9 }
  0x4f   :  { %470 = vmatprep.subr.bf16.mxu1 %v1892_v10 }
  0x51   :  { %430 = vmatpush1.bf16.msra.mxu0 %v1894_v11 }
  0x52   :  { %471 = vmatpush1.bf16.msra.mxu1 %v1896_v12  ;;  %431 = vmatprep.subr.bf16.mxu0 %v1900_v13 }
  0x53   :  { %472 = vmatprep.subr.bf16.mxu1 %v1904_v14 }
  0x55   :  { %432 = vmatpush1.bf16.msra.mxu0 %v1906_v15 }
  0x56   :  { %473 = vmatpush1.bf16.msra.mxu1 %v1910_v16  ;;  %433 = vmatprep.subr.bf16.mxu0 %v1912_v17 }
  0x57   :  { %474 = vmatprep.subr.bf16.mxu1 %v1916_v18 }
  0x59   :  { %434 = vmatpush1.bf16.msra.mxu0 %v1918_v19 }
  0x5a   :  { %475 = vmatpush1.bf16.msra.mxu1 %v1920_v20  ;;  %435 = vmatprep.subr.bf16.mxu0 %v1924_v21 }
  0x5b   :  { %476 = vmatprep.subr.bf16.mxu1 %v1928_v22 }
  0x5d   :  { %436 = vmatpush1.bf16.msra.mxu0 %v1932_v23 }
  0x5e   :  { %477 = vmatpush1.bf16.msra.mxu1 %v1934_v24  ;;  %437 = vmatprep.subr.bf16.mxu0 %v1938_v25 }
  0x5f   :  { %478 = vmatprep.subr.bf16.mxu1 %v1940_v26 }
  0x61   :  { %438 = vmatpush1.bf16.msra.mxu0 %v1950_v28 }
  0x62   :  { %479 = vmatpush1.bf16.msra.mxu1 %v1952_v29  ;;  %439 = vmatprep.subr.bf16.mxu0 %v1956_v30 }
  0x63   :  { %480 = vmatprep.subr.bf16.mxu1 %v1958_v31 }
  0x65   :  { %440 = vmatpush1.bf16.msra.mxu0 %v1962_v32 }
  0x66   :  { %481 = vmatpush1.bf16.msra.mxu1 %v1964_v33  ;;  %548 = vmatprep.subr.bf16.mxu0 %v1868_v1 }
  0x67   :  { %589 = vmatprep.subr.bf16.mxu1 %v1870_v2 }
  0xaf   :  { %v90_v41 = vpop.permute.xlu0 %89 }
  0xb0   :  { %v113_v44 = vmul.f32 %v2012_v40, %v90_v41  ;;  %v114_v47 = vmul.f32 %v2017_v43, %v90_v41  ;;  %v115_v57 = vmul.f32 %v2026_v51, %v90_v41  ;;  %v116_v39 = vmul.f32 %v2029_v55, %v90_v41 }
  0xb2   :  { %v138_v50 = vadd.f32 %v2020_v45, %v113_v44  ;;  %v139_v52 = vadd.f32 %v2023_v48, %v114_v47  ;;  %v2035_v44 = vrot.slane %v53_v42, %v107_v49  ;;  %v140_v38 = vadd.f32 %v2032_v58, %v115_v57 }
  0xb4   :  { %v141_v46 = vadd.f32 %v2035_v44, %v116_v39  ;;  %v1797_v39 = vmov 2  }
  0xb5   :  { %1525 = vset.pattern.permute.xlu1 %v1797_v39 }
  0xb6   :  { %536 = vperm.xlu1 %1525, %v1945_v27  }
 0x11b   :  { %v336_v53 = vpop.f32.mrb[0].mxu0 }
 0x11c   :  { %v377_v54 = vpop.f32.mrb[0].mxu1  ;;  %v384_v56 = vadd.f32 %v336_v53, %v138_v50  ;;  %v338_v59 = vpop.f32.mrb[1].mxu0 }
 0x11d   :  { %v379_v60 = vpop.f32.mrb[1].mxu1  ;;  %v385_v61 = vadd.f32 %v338_v59, %v139_v52  ;;  %v340_v62 = vpop.f32.mrb[2].mxu0  ;;  %v386_v47 = vadd.f32 %v377_v54, %v140_v38 }
 0x11e   :  { %v381_v63 = vpop.f32.mrb[2].mxu1  ;;  %v1405_v34 = vmul.f32 -1.442695, %v384_v56  ;;  %v341_v35 = vpop.f32.mrb[3].mxu0  ;;  %v387_v50 = vadd.f32 %v379_v60, %v141_v46 }
 0x11f   :  { %v382_v36 = vpop.f32.mrb[3].mxu1  ;;  %v1406_v37 = vmul.f32 -1.442695, %v385_v61  ;;  %v1407_v53 = vmul.f32 -1.442695, %v386_v47  ;;  %v414_v38 = vpop.permute.xlu0 %413 }
 0x120   :  { %1580 = vpow2.f32 %v1405_v34  ;;  %v416_v46 = vmul.f32 %v414_v38, %v2012_v40  ;;  %v417_v47 = vmul.f32 %v414_v38, %v2017_v43 }
 0x121   :  { %1582 = vpow2.f32 %v1406_v37 }
 0x122   :  { %1584 = vtanh.f32 %v387_v50  ;;  %v420_v50 = vadd.f32 %v416_v46, %v2020_v45 }
 0x123   :  { %1586 = vpow2.f32 %v1407_v53  ;;  %v421_v53 = vadd.f32 %v417_v47, %v2023_v48 }
 0x12a   :  { %v1581_v52 = vpop.eup %1580 }
 0x12b   :  { %v397_v59 = vadd.f32 1.0, %v1581_v52  ;;  %v1583_v56 = vpop.eup %1582 }
 0x12c   :  { %v398_v61 = vadd.f32 1.0, %v1583_v56  ;;  %v1585_v41 = vpop.eup %1584 }
 0x12d   :  { %1588 = vrcp.f32 %v397_v59  ;;  %v1587_v42 = vpop.eup %1586 }
 0x12e   :  { %1590 = vrcp.f32 %v398_v61  ;;  %v399_v57 = vadd.f32 1.0, %v1587_v42  ;;  %v418_v61 = vmul.f32 %v414_v38, %v2026_v51 }
 0x130   :  { %1592 = vrcp.f32 %v399_v57 }
 0x137   :  { %v1589_v49 = vpop.eup %1588 }
 0x138   :  { %v408_v62 = vmul.f32 %v1589_v49, %v1585_v41  ;;  %v1591_v63 = vpop.eup %1590 }
 0x139   :  { %v407_v34 = vmul.f32 0.0, %v1591_v63 }
 0x13a   :  { %v1593_v54 = vpop.eup %1592 }
 0x13b   :  { %v2039_v35 = vadd.f32 %v408_v62, %v407_v34 }
 0x13d   :  { %1594 = vtanh.f32 %v2039_v35 }
 0x147   :  { %v1595_v60 = vpop.eup %1594 }
 0x148   :  { %v411_v36 = vmul.f32 %v1595_v60, %v1593_v54 }
 0x14a   :  { %v424_v37 = vpack.c.bf16 %v411_v36, %v411_v36  ;;  %v419_v36 = vmul.f32 %v414_v38, %v2029_v55 }
 0x14c   :  { %458 = vmatmul.mubr.bf16.vlgmr.msra.gmra.mrb[4].mxu0 %v424_v37  ;;  %499 = vmatmul.mubr.bf16.vlgmr.msra.gmra.mrb[4].mxu1 %v424_v37  ;;  %v422_v37 = vadd.f32 %v418_v61, %v2032_v58  ;;  %v423_v39 = vadd.f32 %v419_v36, %v2035_v44  ;;  %v537_v36 = vpop.permute.xlu1 %536 }
 0x14d   :  { %549 = vmatpush1.bf16.msra.mxu0 %v1873_v3  ;;  %590 = vmatpush1.bf16.msra.mxu1 %v1875_v4 }
 0x14e   :  { %550 = vmatprep.subr.bf16.mxu0 %v1878_v5  ;;  %591 = vmatprep.subr.bf16.mxu1 %v1882_v6 }
 0x14f   :  { %580 = vmatprep.mubr.bf16.mxu0 %v2371_v0  ;;  %621 = vmatprep.mubr.bf16.mxu1 %v2371_v0 }
 0x151   :  { %551 = vmatpush1.bf16.msra.mxu0 %v1884_v7  ;;  %592 = vmatpush1.bf16.msra.mxu1 %v1887_v8 }
 0x152   :  { %552 = vmatprep.subr.bf16.mxu0 %v1890_v9  ;;  %593 = vmatprep.subr.bf16.mxu1 %v1892_v10 }
 0x155   :  { %553 = vmatpush1.bf16.msra.mxu0 %v1894_v11  ;;  %594 = vmatpush1.bf16.msra.mxu1 %v1896_v12 }
 0x156   :  { %554 = vmatprep.subr.bf16.mxu0 %v1900_v13  ;;  %595 = vmatprep.subr.bf16.mxu1 %v1904_v14 }
 0x159   :  { %555 = vmatpush1.bf16.msra.mxu0 %v1906_v15  ;;  %596 = vmatpush1.bf16.msra.mxu1 %v1910_v16 }
 0x15a   :  { %556 = vmatprep.subr.bf16.mxu0 %v1912_v17  ;;  %597 = vmatprep.subr.bf16.mxu1 %v1916_v18 }
 0x15d   :  { %557 = vmatpush1.bf16.msra.mxu0 %v1918_v19  ;;  %598 = vmatpush1.bf16.msra.mxu1 %v1920_v20 }
 0x15e   :  { %558 = vmatprep.subr.bf16.mxu0 %v1924_v21  ;;  %599 = vmatprep.subr.bf16.mxu1 %v1928_v22 }
 0x161   :  { %559 = vmatpush1.bf16.msra.mxu0 %v1932_v23  ;;  %600 = vmatpush1.bf16.msra.mxu1 %v1934_v24 }
 0x162   :  { %560 = vmatprep.subr.bf16.mxu0 %v1938_v25  ;;  %601 = vmatprep.subr.bf16.mxu1 %v1940_v26 }
 0x165   :  { %561 = vmatpush1.bf16.msra.mxu0 %v1950_v28  ;;  %602 = vmatpush1.bf16.msra.mxu1 %v1952_v29 }
 0x166   :  { %562 = vmatprep.subr.bf16.mxu0 %v1956_v30  ;;  %603 = vmatprep.subr.bf16.mxu1 %v1958_v31 }
 0x169   :  { %563 = vmatpush1.bf16.msra.mxu0 %v1962_v32  ;;  %604 = vmatpush1.bf16.msra.mxu1 %v1964_v33 }
 0x16a   :  { %671 = vmatprep.subr.bf16.mxu0 %v1868_v1  ;;  %712 = vmatprep.subr.bf16.mxu1 %v1870_v2 }
 0x21f   :  { %v459_v52 = vpop.f32.mrb[4].mxu0  ;;  %v500_v59 = vpop.f32.mrb[4].mxu1 }
 0x220   :  { %v507_v56 = vadd.f32 %v459_v52, %v420_v50  ;;  %v461_v41 = vpop.f32.mrb[5].mxu0  ;;  %v502_v42 = vpop.f32.mrb[5].mxu1  ;;  %v509_v46 = vadd.f32 %v500_v59, %v422_v37  ;;  %v539_v37 = vmul.f32 %v537_v36, %v2012_v40 }
 0x221   :  { %v508_v49 = vadd.f32 %v461_v41, %v421_v53  ;;  %v463_v62 = vpop.f32.mrb[6].mxu0  ;;  %v504_v63 = vpop.f32.mrb[6].mxu1  ;;  %v510_v47 = vadd.f32 %v502_v42, %v423_v39  ;;  %v540_v39 = vmul.f32 %v537_v36, %v2017_v43 }
 0x222   :  { %v1408_v57 = vmul.f32 -1.442695, %v507_v56  ;;  %v464_v34 = vpop.f32.mrb[7].mxu0  ;;  %v505_v54 = vpop.f32.mrb[7].mxu1  ;;  %v1410_v50 = vmul.f32 -1.442695, %v509_v46  ;;  %v543_v46 = vadd.f32 %v539_v37, %v2020_v45 }
 0x223   :  { %v1409_v60 = vmul.f32 -1.442695, %v508_v49 }
 0x224   :  { %1596 = vpow2.f32 %v1408_v57 }
 0x225   :  { %1598 = vpow2.f32 %v1409_v60 }
 0x226   :  { %1600 = vtanh.f32 %v510_v47  ;;  %v544_v47 = vadd.f32 %v540_v39, %v2023_v48 }
 0x227   :  { %1602 = vpow2.f32 %v1410_v50 }
 0x22e   :  { %v1597_v52 = vpop.eup %1596 }
 0x22f   :  { %v520_v0 = vadd.f32 1.0, %v1597_v52  ;;  %v1599_v53 = vpop.eup %1598 }
 0x230   :  { %v521_v56 = vadd.f32 1.0, %v1599_v53  ;;  %v1601_v41 = vpop.eup %1600 }
 0x231   :  { %1604 = vrcp.f32 %v520_v0  ;;  %v1603_v49 = vpop.eup %1602  ;;  %v2376_v0 = vmov 0  }
 0x232   :  { %1606 = vrcp.f32 %v521_v56  ;;  %v522_v61 = vadd.f32 1.0, %v1603_v49  ;;  %v541_v56 = vmul.f32 %v537_v36, %v2026_v51 }
 0x234   :  { %1608 = vrcp.f32 %v522_v61 }
 0x23b   :  { %v1605_v38 = vpop.eup %1604 }
 0x23c   :  { %v531_v62 = vmul.f32 %v1605_v38, %v1601_v41  ;;  %v1607_v63 = vpop.eup %1606 }
 0x23d   :  { %v530_v57 = vmul.f32 %v1607_v63, %v2039_v35  ;;  %v1798_v35 = vmov 3  }
 0x23e   :  { %v1609_v59 = vpop.eup %1608  ;;  %1526 = vset.pattern.permute.xlu1 %v1798_v35 }
 0x23f   :  { %v2086_v34 = vadd.f32 %v531_v62, %v530_v57  ;;  %659 = vperm.xlu1 %1526, %v1945_v27  }
 0x241   :  { %1610 = vtanh.f32 %v2086_v34 }
 0x24b   :  { %v1611_v42 = vpop.eup %1610 }
 0x24c   :  { %v534_v54 = vmul.f32 %v1611_v42, %v1609_v59 }
 0x24e   :  { %v547_v60 = vpack.c.bf16 %v534_v54, %v534_v54  ;;  %v542_v54 = vmul.f32 %v537_v36, %v2029_v55 }
 0x250   :  { %581 = vmatmul.mubr.bf16.vlgmr.msra.gmra.mrb[8].mxu0 %v547_v60  ;;  %622 = vmatmul.mubr.bf16.vlgmr.msra.gmra.mrb[8].mxu1 %v547_v60  ;;  %v545_v60 = vadd.f32 %v541_v56, %v2032_v58  ;;  %v546_v35 = vadd.f32 %v542_v54, %v2035_v44 }
 0x251   :  { %672 = vmatpush1.bf16.msra.mxu0 %v1873_v3  ;;  %713 = vmatpush1.bf16.msra.mxu1 %v1875_v4 }
 0x252   :  { %673 = vmatprep.subr.bf16.mxu0 %v1878_v5  ;;  %714 = vmatprep.subr.bf16.mxu1 %v1882_v6 }
 0x253   :  { %703 = vmatprep.mubr.bf16.mxu0 %v2376_v0  ;;  %744 = vmatprep.mubr.bf16.mxu1 %v2376_v0 }
 0x255   :  { %674 = vmatpush1.bf16.msra.mxu0 %v1884_v7  ;;  %715 = vmatpush1.bf16.msra.mxu1 %v1887_v8 }
 0x256   :  { %675 = vmatprep.subr.bf16.mxu0 %v1890_v9  ;;  %716 = vmatprep.subr.bf16.mxu1 %v1892_v10 }
 0x259   :  { %676 = vmatpush1.bf16.msra.mxu0 %v1894_v11  ;;  %717 = vmatpush1.bf16.msra.mxu1 %v1896_v12 }
 0x25a   :  { %677 = vmatprep.subr.bf16.mxu0 %v1900_v13  ;;  %718 = vmatprep.subr.bf16.mxu1 %v1904_v14 }
 0x25d   :  { %678 = vmatpush1.bf16.msra.mxu0 %v1906_v15  ;;  %719 = vmatpush1.bf16.msra.mxu1 %v1910_v16 }
 0x25e   :  { %679 = vmatprep.subr.bf16.mxu0 %v1912_v17  ;;  %720 = vmatprep.subr.bf16.mxu1 %v1916_v18 }
 0x261   :  { %680 = vmatpush1.bf16.msra.mxu0 %v1918_v19  ;;  %721 = vmatpush1.bf16.msra.mxu1 %v1920_v20 }
 0x262   :  { %681 = vmatprep.subr.bf16.mxu0 %v1924_v21  ;;  %722 = vmatprep.subr.bf16.mxu1 %v1928_v22 }
 0x265   :  { %682 = vmatpush1.bf16.msra.mxu0 %v1932_v23  ;;  %723 = vmatpush1.bf16.msra.mxu1 %v1934_v24 }
 0x266   :  { %683 = vmatprep.subr.bf16.mxu0 %v1938_v25  ;;  %724 = vmatprep.subr.bf16.mxu1 %v1940_v26 }
 0x269   :  { %684 = vmatpush1.bf16.msra.mxu0 %v1950_v28  ;;  %725 = vmatpush1.bf16.msra.mxu1 %v1952_v29 }
 0x26a   :  { %685 = vmatprep.subr.bf16.mxu0 %v1956_v30  ;;  %726 = vmatprep.subr.bf16.mxu1 %v1958_v31 }
 0x26d   :  { %686 = vmatpush1.bf16.msra.mxu0 %v1962_v32  ;;  %727 = vmatpush1.bf16.msra.mxu1 %v1964_v33 }
 0x26e   :  { %794 = vmatprep.subr.bf16.mxu0 %v1868_v1  ;;  %835 = vmatprep.subr.bf16.mxu1 %v1870_v2 }
 0x323   :  { %v582_v50 = vpop.f32.mrb[8].mxu0  ;;  %v623_v52 = vpop.f32.mrb[8].mxu1 }
 0x324   :  { %v630_v53 = vadd.f32 %v582_v50, %v543_v46  ;;  %v584_v41 = vpop.f32.mrb[9].mxu0  ;;  %v625_v49 = vpop.f32.mrb[9].mxu1  ;;  %v632_v37 = vadd.f32 %v623_v52, %v545_v60 }
 0x325   :  { %v631_v38 = vadd.f32 %v584_v41, %v544_v47  ;;  %v586_v62 = vpop.f32.mrb[10].mxu0  ;;  %v627_v63 = vpop.f32.mrb[10].mxu1  ;;  %v633_v39 = vadd.f32 %v625_v49, %v546_v35 }
 0x326   :  { %v1411_v61 = vmul.f32 -1.442695, %v630_v53  ;;  %v587_v57 = vpop.f32.mrb[11].mxu0  ;;  %v628_v59 = vpop.f32.mrb[11].mxu1  ;;  %v1413_v46 = vmul.f32 -1.442695, %v632_v37 }
 0x327   :  { %v1412_v42 = vmul.f32 -1.442695, %v631_v38 }
 0x328   :  { %1612 = vpow2.f32 %v1411_v61 }
 0x329   :  { %1614 = vpow2.f32 %v1412_v42 }
 0x32a   :  { %1616 = vtanh.f32 %v633_v39 }
 0x32b   :  { %1618 = vpow2.f32 %v1413_v46 }
 0x332   :  { %v1613_v50 = vpop.eup %1612 }
 0x333   :  { %v643_v51 = vadd.f32 1.0, %v1613_v50  ;;  %v1615_v47 = vpop.eup %1614 }
 0x334   :  { %v644_v53 = vadd.f32 1.0, %v1615_v47  ;;  %v1617_v41 = vpop.eup %1616  ;;  %v2377_v47 = vld [vmem:[#allocation8_spill] sm:$0xff] }
 0x335   :  { %1620 = vrcp.f32 %v643_v51  ;;  %v1619_v38 = vpop.eup %1618  ;;  %v1799_v51 = vmov 4  }
 0x336   :  { %1622 = vrcp.f32 %v644_v53  ;;  %v645_v56 = vadd.f32 1.0, %v1619_v38  ;;  %1527 = vset.pattern.permute.xlu1 %v1799_v51 }
 0x337   :  { %782 = vperm.xlu1 %1527, %v1945_v27  }
 0x338   :  { %1624 = vrcp.f32 %v645_v56 }
 0x33f   :  { %v1621_v36 = vpop.eup %1620 }
 0x340   :  { %v654_v62 = vmul.f32 %v1621_v36, %v1617_v41  ;;  %v1623_v63 = vpop.eup %1622 }
 0x341   :  { %v653_v61 = vmul.f32 %v1623_v63, %v2086_v34  ;;  %v660_v34 = vpop.permute.xlu1 %659 }
 0x342   :  { %v1625_v52 = vpop.eup %1624  ;;  %v662_v54 = vmul.f32 %v660_v34, %v2012_v40  ;;  %v663_v60 = vmul.f32 %v660_v34, %v2017_v43  ;;  %v664_v53 = vmul.f32 %v660_v34, %v2377_v47 }
 0x343   :  { %v2133_v57 = vadd.f32 %v654_v62, %v653_v61 }
 0x344   :  { %v666_v35 = vadd.f32 %v662_v54, %v2020_v45  ;;  %v667_v37 = vadd.f32 %v663_v60, %v2023_v48 }
 0x345   :  { %1626 = vtanh.f32 %v2133_v57 }
 0x34f   :  { %v1627_v49 = vpop.eup %1626 }
 0x350   :  { %v657_v59 = vmul.f32 %v1627_v49, %v1625_v52 }
 0x352   :  { %v670_v42 = vpack.c.bf16 %v657_v59, %v657_v59  ;;  %v665_v59 = vmul.f32 %v660_v34, %v2029_v55 }
 0x354   :  { %704 = vmatmul.mubr.bf16.vlgmr.msra.gmra.mrb[12].mxu0 %v670_v42  ;;  %745 = vmatmul.mubr.bf16.vlgmr.msra.gmra.mrb[12].mxu1 %v670_v42  ;;  %v668_v42 = vadd.f32 %v664_v53, %v2032_v58  ;;  %v669_v51 = vadd.f32 %v665_v59, %v2035_v44 }
 0x355   :  { %795 = vmatpush1.bf16.msra.mxu0 %v1873_v3  ;;  %836 = vmatpush1.bf16.msra.mxu1 %v1875_v4 }
 0x356   :  { %796 = vmatprep.subr.bf16.mxu0 %v1878_v5  ;;  %837 = vmatprep.subr.bf16.mxu1 %v1882_v6 }
 0x357   :  { %826 = vmatprep.mubr.bf16.mxu0 %v2376_v0  ;;  %867 = vmatprep.mubr.bf16.mxu1 %v2376_v0 }
 0x359   :  { %797 = vmatpush1.bf16.msra.mxu0 %v1884_v7  ;;  %838 = vmatpush1.bf16.msra.mxu1 %v1887_v8 }
 0x35a   :  { %798 = vmatprep.subr.bf16.mxu0 %v1890_v9  ;;  %839 = vmatprep.subr.bf16.mxu1 %v1892_v10 }
 0x35d   :  { %799 = vmatpush1.bf16.msra.mxu0 %v1894_v11  ;;  %840 = vmatpush1.bf16.msra.mxu1 %v1896_v12 }
 0x35e   :  { %800 = vmatprep.subr.bf16.mxu0 %v1900_v13  ;;  %841 = vmatprep.subr.bf16.mxu1 %v1904_v14 }
 0x361   :  { %801 = vmatpush1.bf16.msra.mxu0 %v1906_v15  ;;  %842 = vmatpush1.bf16.msra.mxu1 %v1910_v16 }
 0x362   :  { %802 = vmatprep.subr.bf16.mxu0 %v1912_v17  ;;  %843 = vmatprep.subr.bf16.mxu1 %v1916_v18 }
 0x365   :  { %803 = vmatpush1.bf16.msra.mxu0 %v1918_v19  ;;  %844 = vmatpush1.bf16.msra.mxu1 %v1920_v20 }
 0x366   :  { %804 = vmatprep.subr.bf16.mxu0 %v1924_v21  ;;  %845 = vmatprep.subr.bf16.mxu1 %v1928_v22 }
 0x369   :  { %805 = vmatpush1.bf16.msra.mxu0 %v1932_v23  ;;  %846 = vmatpush1.bf16.msra.mxu1 %v1934_v24 }
 0x36a   :  { %806 = vmatprep.subr.bf16.mxu0 %v1938_v25  ;;  %847 = vmatprep.subr.bf16.mxu1 %v1940_v26 }
 0x36d   :  { %807 = vmatpush1.bf16.msra.mxu0 %v1950_v28  ;;  %848 = vmatpush1.bf16.msra.mxu1 %v1952_v29 }
 0x36e   :  { %808 = vmatprep.subr.bf16.mxu0 %v1956_v30  ;;  %849 = vmatprep.subr.bf16.mxu1 %v1958_v31 }
 0x371   :  { %809 = vmatpush1.bf16.msra.mxu0 %v1962_v32  ;;  %850 = vmatpush1.bf16.msra.mxu1 %v1964_v33 }
 0x372   :  { %917 = vmatprep.subr.bf16.mxu0 %v1868_v1  ;;  %958 = vmatprep.subr.bf16.mxu1 %v1870_v2 }
 0x427   :  { %v705_v39 = vpop.f32.mrb[12].mxu0  ;;  %v746_v46 = vpop.f32.mrb[12].mxu1 }
 0x428   :  { %v753_v50 = vadd.f32 %v705_v39, %v666_v35  ;;  %v707_v41 = vpop.f32.mrb[13].mxu0  ;;  %v748_v38 = vpop.f32.mrb[13].mxu1  ;;  %v755_v54 = vadd.f32 %v746_v46, %v668_v42 }
 0x429   :  { %v754_v36 = vadd.f32 %v707_v41, %v667_v37  ;;  %v709_v62 = vpop.f32.mrb[14].mxu0  ;;  %v750_v63 = vpop.f32.mrb[14].mxu1  ;;  %v756_v60 = vadd.f32 %v748_v38, %v669_v51 }
 0x42a   :  { %v1414_v56 = vmul.f32 -1.442695, %v753_v50  ;;  %v710_v61 = vpop.f32.mrb[15].mxu0  ;;  %v751_v52 = vpop.f32.mrb[15].mxu1  ;;  %v1416_v35 = vmul.f32 -1.442695, %v755_v54 }
 0x42b   :  { %v1415_v49 = vmul.f32 -1.442695, %v754_v36 }
 0x42c   :  { %1628 = vpow2.f32 %v1414_v56 }
 0x42d   :  { %1630 = vpow2.f32 %v1415_v49 }
 0x42e   :  { %1632 = vtanh.f32 %v756_v60 }
 0x42f   :  { %1634 = vpow2.f32 %v1416_v35 }
 0x436   :  { %v1629_v39 = vpop.eup %1628 }
 0x437   :  { %v766_v47 = vadd.f32 1.0, %v1629_v39  ;;  %v1631_v37 = vpop.eup %1630 }
 0x438   :  { %v767_v50 = vadd.f32 1.0, %v1631_v37  ;;  %v1633_v41 = vpop.eup %1632 }
 0x439   :  { %1636 = vrcp.f32 %v766_v47  ;;  %v1635_v36 = vpop.eup %1634 }
 0x43a   :  { %1638 = vrcp.f32 %v767_v50  ;;  %v768_v53 = vadd.f32 1.0, %v1635_v36 }
 0x43c   :  { %1640 = vrcp.f32 %v768_v53 }
 0x443   :  { %v1637_v34 = vpop.eup %1636 }
 0x444   :  { %v777_v62 = vmul.f32 %v1637_v34, %v1633_v41  ;;  %v1639_v63 = vpop.eup %1638 }
 0x445   :  { %v776_v56 = vmul.f32 %v1639_v63, %v2133_v57 }
 0x446   :  { %v1641_v46 = vpop.eup %1640 }
 0x447   :  { %v2180_v61 = vadd.f32 %v777_v62, %v776_v56 }
 0x449   :  { %1642 = vtanh.f32 %v2180_v61 }
 0x453   :  { %v1643_v38 = vpop.eup %1642 }
 0x454   :  { %v780_v52 = vmul.f32 %v1643_v38, %v1641_v46 }
 0x456   :  { %v793_v49 = vpack.c.bf16 %v780_v52, %v780_v52 }
 0x458   :  { %827 = vmatmul.mubr.bf16.vlgmr.msra.gmra.mrb[16].mxu0 %v793_v49  ;;  %868 = vmatmul.mubr.bf16.vlgmr.msra.gmra.mrb[16].mxu1 %v793_v49  ;;  %v2230_v49 = vld [vmem:[#allocation2] ss:$16 sps:$4 sm:$0xff]  }
 0x459   :  { %918 = vmatpush1.bf16.msra.mxu0 %v1873_v3  ;;  %959 = vmatpush1.bf16.msra.mxu1 %v1875_v4  ;;  %v1800_v3 = vmov 5   ;;  %v783_v4 = vpop.permute.xlu1 %782 }
 0x45a   :  { %919 = vmatprep.subr.bf16.mxu0 %v1878_v5  ;;  %960 = vmatprep.subr.bf16.mxu1 %v1882_v6  ;;  %v785_v5 = vmul.f32 %v783_v4, %v2012_v40  ;;  %v786_v6 = vmul.f32 %v783_v4, %v2017_v43 }
 0x45b   :  { %949 = vmatprep.mubr.bf16.mxu0 %v2376_v0  ;;  %990 = vmatprep.mubr.bf16.mxu1 %v2376_v0 }
 0x45c   :  { %1528 = vset.pattern.permute.xlu0 %v1800_v3  ;;  %v2233_v3 = vld [vmem:[#allocation2 + $0x8] ss:$16 sps:$4 sm:$0xff]  }
 0x45d   :  { %920 = vmatpush1.bf16.msra.mxu0 %v1884_v7  ;;  %961 = vmatpush1.bf16.msra.mxu1 %v1887_v8  ;;  %v789_v7 = vadd.f32 %v785_v5, %v2020_v45  ;;  %v790_v8 = vadd.f32 %v786_v6, %v2023_v48  ;;  %v2244_v5 = vld [vmem:[#allocation2 + $0x20] ss:$16 sps:$4 sm:$0xff]   ;;  %v2247_v6 = vld [vmem:[#allocation2 + $0x28] ss:$16 sps:$4 sm:$0xff]  }
 0x45e   :  { %921 = vmatprep.subr.bf16.mxu0 %v1890_v9  ;;  %962 = vmatprep.subr.bf16.mxu1 %v1892_v10 }
 0x45f   :  { %905 = vperm.xlu0 %1528, %v1945_v27  }
 0x461   :  { %922 = vmatpush1.bf16.msra.mxu0 %v1894_v11  ;;  %963 = vmatpush1.bf16.msra.mxu1 %v1896_v12  ;;  %v2378_v12 = vld [vmem:[#allocation8_spill] sm:$0xff] }
 0x462   :  { %923 = vmatprep.subr.bf16.mxu0 %v1900_v13  ;;  %964 = vmatprep.subr.bf16.mxu1 %v1904_v14 }
 0x465   :  { %924 = vmatpush1.bf16.msra.mxu0 %v1906_v15  ;;  %965 = vmatpush1.bf16.msra.mxu1 %v1910_v16 }
 0x466   :  { %925 = vmatprep.subr.bf16.mxu0 %v1912_v17  ;;  %966 = vmatprep.subr.bf16.mxu1 %v1916_v18 }
 0x469   :  { %926 = vmatpush1.bf16.msra.mxu0 %v1918_v19  ;;  %967 = vmatpush1.bf16.msra.mxu1 %v1920_v20 }
 0x46a   :  { %927 = vmatprep.subr.bf16.mxu0 %v1924_v21  ;;  %968 = vmatprep.subr.bf16.mxu1 %v1928_v22  ;;  %v788_v21 = vmul.f32 %v783_v4, %v2029_v55 }
 0x46c   :  { %v792_v47 = vadd.f32 %v788_v21, %v2035_v44 }
 0x46d   :  { %928 = vmatpush1.bf16.msra.mxu0 %v1932_v23  ;;  %969 = vmatpush1.bf16.msra.mxu1 %v1934_v24 }
 0x46e   :  { %929 = vmatprep.subr.bf16.mxu0 %v1938_v25  ;;  %970 = vmatprep.subr.bf16.mxu1 %v1940_v26 }
 0x471   :  { %930 = vmatpush1.bf16.msra.mxu0 %v1950_v28  ;;  %971 = vmatpush1.bf16.msra.mxu1 %v1952_v29 }
 0x472   :  { %931 = vmatprep.subr.bf16.mxu0 %v1956_v30  ;;  %972 = vmatprep.subr.bf16.mxu1 %v1958_v31 }
 0x475   :  { %932 = vmatpush1.bf16.msra.mxu0 %v1962_v32  ;;  %973 = vmatpush1.bf16.msra.mxu1 %v1964_v33 }
 0x476   :  { %1040 = vmatprep.subr.bf16.mxu0 %v1868_v1  ;;  %1081 = vmatprep.subr.bf16.mxu1 %v1870_v2  ;;  %v787_v1 = vmul.f32 %v783_v4, %v2378_v12  ;;  %v2239_v4 = vld [vmem:[#allocation2 + $0x2c] ss:$16 sps:$4 sm:$0xff]  }
 0x478   :  { %v791_v57 = vadd.f32 %v787_v1, %v2032_v58  ;;  %v2265_v1 = vld [vmem:[#allocation2 + $0x6c] ss:$16 sps:$4 sm:$0xff]  }
 0x52b   :  { %v828_v9 = vpop.f32.mrb[16].mxu0  ;;  %v869_v10 = vpop.f32.mrb[16].mxu1 }
 0x52c   :  { %v876_v11 = vadd.f32 %v828_v9, %v789_v7  ;;  %v830_v13 = vpop.f32.mrb[17].mxu0  ;;  %v871_v2 = vpop.f32.mrb[17].mxu1  ;;  %v878_v59 = vadd.f32 %v869_v10, %v791_v57  ;;  %v2250_v7 = vld [vmem:[#allocation2 + $0x44] ss:$16 sps:$4 sm:$0xff]   ;;  %v2256_v9 = vld [vmem:[#allocation2 + $0x40] ss:$16 sps:$4 sm:$0xff]  }
 0x52d   :  { %v877_v14 = vadd.f32 %v830_v13, %v790_v8  ;;  %v832_v15 = vpop.f32.mrb[18].mxu0  ;;  %v873_v16 = vpop.f32.mrb[18].mxu1  ;;  %v879_v42 = vadd.f32 %v871_v2, %v792_v47  ;;  %v2253_v8 = vld [vmem:[#allocation2 + $0x4c] ss:$16 sps:$4 sm:$0xff]   ;;  %v2259_v10 = vld [vmem:[#allocation2 + $0x48] ss:$16 sps:$4 sm:$0xff]  }
 0x52e   :  { %v1417_v17 = vmul.f32 -1.442695, %v876_v11  ;;  %v833_v18 = vpop.f32.mrb[19].mxu0  ;;  %v874_v19 = vpop.f32.mrb[19].mxu1  ;;  %v1419_v51 = vmul.f32 -1.442695, %v878_v59 }
 0x52f   :  { %v1418_v20 = vmul.f32 -1.442695, %v877_v14  ;;  %v2262_v11 = vld [vmem:[#allocation2 + $0x64] ss:$16 sps:$4 sm:$0xff]   ;;  %v2268_v13 = vld [vmem:[#allocation2 + $0x60] ss:$16 sps:$4 sm:$0xff]  }
 0x530   :  { %1644 = vpow2.f32 %v1417_v17  ;;  %v2271_v2 = vld [vmem:[#allocation2 + $0x68] ss:$16 sps:$4 sm:$0xff]   ;;  %v2274_v14 = vld [vmem:[#allocation2 + $0x84] ss:$16 sps:$4 sm:$0xff]   ;;  %v2277_v15 = vld [vmem:[#allocation2 + $0x8c] ss:$16 sps:$4 sm:$0xff]  }
 0x531   :  { %1646 = vpow2.f32 %v1418_v20  ;;  %v2280_v16 = vld [vmem:[#allocation2 + $0x80] ss:$16 sps:$4 sm:$0xff]   ;;  %v2283_v17 = vld [vmem:[#allocation2 + $0x88] ss:$16 sps:$4 sm:$0xff]   ;;  %v2286_v18 = vld [vmem:[#allocation2 + $0xa4] ss:$16 sps:$4 sm:$0xff]  }
 0x532   :  { %1648 = vtanh.f32 %v879_v42 }
 0x533   :  { %1650 = vpow2.f32 %v1419_v51 }
 0x53a   :  { %v1645_v54 = vpop.eup %1644 }
 0x53b   :  { %v889_v60 = vadd.f32 1.0, %v1645_v54  ;;  %v1647_v35 = vpop.eup %1646 }
 0x53c   :  { %v890_v39 = vadd.f32 1.0, %v1647_v35  ;;  %v1649_v37 = vpop.eup %1648 }
 0x53d   :  { %1652 = vrcp.f32 %v889_v60  ;;  %v1651_v50 = vpop.eup %1650 }
 0x53e   :  { %1654 = vrcp.f32 %v890_v39  ;;  %v891_v62 = vadd.f32 1.0, %v1651_v50 }
 0x540   :  { %1656 = vrcp.f32 %v891_v62 }
 0x547   :  { %v1653_v41 = vpop.eup %1652 }
 0x548   :  { %v900_v36 = vmul.f32 %v1653_v41, %v1649_v37  ;;  %v1655_v34 = vpop.eup %1654 }
 0x549   :  { %v899_v63 = vmul.f32 %v1655_v34, %v2180_v61  ;;  %v2236_v61 = vld [vmem:[#allocation2 + $0x24] ss:$16 sps:$4 sm:$0xff]  }
 0x54a   :  { %v1657_v56 = vpop.eup %1656 }
 0x54b   :  { %v2227_v53 = vadd.f32 %v900_v36, %v899_v63 }
 0x54d   :  { %1658 = vtanh.f32 %v2227_v53 }
 0x557   :  { %v1659_v46 = vpop.eup %1658 }
 0x558   :  { %v903_v38 = vmul.f32 %v1659_v46, %v1657_v56 }
 0x55a   :  { %v916_v52 = vpack.c.bf16 %v903_v38, %v903_v38 }
 0x55c   :  { %950 = vmatmul.mubr.bf16.vlgmr.msra.gmra.mrb[20].mxu0 %v916_v52  ;;  %991 = vmatmul.mubr.bf16.vlgmr.msra.gmra.mrb[20].mxu1 %v916_v52 }
 0x55d   :  { %1041 = vmatpush1.bf16.msra.mxu0 %v2230_v49  ;;  %1082 = vmatpush1.bf16.msra.mxu1 %v2233_v3 }
 0x55e   :  { %1042 = vmatprep.subr.bf16.mxu0 %v2236_v61  ;;  %1083 = vmatprep.subr.bf16.mxu1 %v2239_v4 }
 0x55f   :  { %1072 = vmatprep.mubr.bf16.mxu0 %v2376_v0  ;;  %1113 = vmatprep.mubr.bf16.mxu1 %v2376_v0 }
 0x561   :  { %1043 = vmatpush1.bf16.msra.mxu0 %v2244_v5  ;;  %1084 = vmatpush1.bf16.msra.mxu1 %v2247_v6 }
 0x562   :  { %1044 = vmatprep.subr.bf16.mxu0 %v2250_v7  ;;  %1085 = vmatprep.subr.bf16.mxu1 %v2253_v8 }
 0x565   :  { %1045 = vmatpush1.bf16.msra.mxu0 %v2256_v9  ;;  %1086 = vmatpush1.bf16.msra.mxu1 %v2259_v10 }
 0x566   :  { %1046 = vmatprep.subr.bf16.mxu0 %v2262_v11  ;;  %1087 = vmatprep.subr.bf16.mxu1 %v2265_v1 }
 0x569   :  { %1047 = vmatpush1.bf16.msra.mxu0 %v2268_v13  ;;  %1088 = vmatpush1.bf16.msra.mxu1 %v2271_v2 }
 0x56a   :  { %1048 = vmatprep.subr.bf16.mxu0 %v2274_v14  ;;  %1089 = vmatprep.subr.bf16.mxu1 %v2277_v15 }
 0x56d   :  { %1049 = vmatpush1.bf16.msra.mxu0 %v2280_v16  ;;  %1090 = vmatpush1.bf16.msra.mxu1 %v2283_v17 }
 0x56e   :  { %1050 = vmatprep.subr.bf16.mxu0 %v2286_v18  ;;  %1091 = vmatprep.subr.bf16.mxu1 %v1928_v22  ;;  %v1727_v22 = vld [vmem:[#allocation2 + $0x4] ss:$16 sps:$4 sm:$0xff]  }
 0x571   :  { %1051 = vmatpush1.bf16.msra.mxu0 %v1932_v23  ;;  %1092 = vmatpush1.bf16.msra.mxu1 %v1934_v24  ;;  %v1728_v23 = vld [vmem:[#allocation2 + $0xc] ss:$16 sps:$4 sm:$0xff]   ;;  %v1801_v24 = vmov 6  }
 0x572   :  { %1052 = vmatprep.subr.bf16.mxu0 %v1938_v25  ;;  %1093 = vmatprep.subr.bf16.mxu1 %v1940_v26  ;;  %v906_v25 = vpop.permute.xlu0 %905 }
 0x573   :  { %1529 = vset.pattern.permute.xlu1 %v1801_v24  ;;  %v908_v26 = vmul.f32 %v906_v25, %v2012_v40  ;;  %v911_v54 = vmul.f32 %v906_v25, %v2029_v55 }
 0x574   :  { %1028 = vperm.xlu1 %1529, %v1945_v27  }
 0x575   :  { %1053 = vmatpush1.bf16.msra.mxu0 %v1950_v28  ;;  %1094 = vmatpush1.bf16.msra.mxu1 %v1952_v29  ;;  %v909_v28 = vmul.f32 %v906_v25, %v2017_v43  ;;  %v912_v29 = vadd.f32 %v908_v26, %v2020_v45  ;;  %v915_v39 = vadd.f32 %v911_v54, %v2035_v44 }
 0x576   :  { %1054 = vmatprep.subr.bf16.mxu0 %v1956_v30  ;;  %1095 = vmatprep.subr.bf16.mxu1 %v1958_v31 }
 0x577   :  { %v913_v30 = vadd.f32 %v909_v28, %v2023_v48 }
 0x579   :  { %1055 = vmatpush1.bf16.msra.mxu0 %v1962_v32  ;;  %1096 = vmatpush1.bf16.msra.mxu1 %v1964_v33  ;;  %v910_v33 = vmul.f32 %v906_v25, %v2378_v12 }
 0x57a   :  { %1163 = vmatprep.subr.bf16.mxu0 %v1727_v22  ;;  %1204 = vmatprep.subr.bf16.mxu1 %v1728_v23 }
 0x57b   :  { %v914_v35 = vadd.f32 %v910_v33, %v2032_v58 }
 0x62f   :  { %v951_v31 = vpop.f32.mrb[20].mxu0  ;;  %v992_v32 = vpop.f32.mrb[20].mxu1 }
 0x630   :  { %v999_v19 = vadd.f32 %v951_v31, %v912_v29  ;;  %v953_v20 = vpop.f32.mrb[21].mxu0  ;;  %v994_v21 = vpop.f32.mrb[21].mxu1  ;;  %v1001_v37 = vadd.f32 %v992_v32, %v914_v35 }
 0x631   :  { %v1000_v57 = vadd.f32 %v953_v20, %v913_v30  ;;  %v955_v47 = vpop.f32.mrb[22].mxu0  ;;  %v996_v59 = vpop.f32.mrb[22].mxu1  ;;  %v1002_v50 = vadd.f32 %v994_v21, %v915_v39 }
 0x632   :  { %v1420_v27 = vmul.f32 -1.442695, %v999_v19  ;;  %v956_v42 = vpop.f32.mrb[23].mxu0  ;;  %v997_v51 = vpop.f32.mrb[23].mxu1  ;;  %v1422_v41 = vmul.f32 -1.442695, %v1001_v37 }
 0x633   :  { %v1421_v60 = vmul.f32 -1.442695, %v1000_v57 }
 0x634   :  { %1660 = vpow2.f32 %v1420_v27 }
 0x635   :  { %1662 = vpow2.f32 %v1421_v60 }
 0x636   :  { %1664 = vtanh.f32 %v1002_v50 }
 0x637   :  { %1666 = vpow2.f32 %v1422_v41 }
 0x63e   :  { %v1661_v36 = vpop.eup %1660 }
 0x63f   :  { %v1012_v34 = vadd.f32 1.0, %v1661_v36  ;;  %v1663_v62 = vpop.eup %1662 }
 0x640   :  { %v1013_v63 = vadd.f32 1.0, %v1663_v62  ;;  %v1665_v56 = vpop.eup %1664 }
 0x641   :  { %1668 = vrcp.f32 %v1012_v34  ;;  %v1667_v46 = vpop.eup %1666 }
 0x642   :  { %1670 = vrcp.f32 %v1013_v63  ;;  %v1014_v23 = vadd.f32 1.0, %v1667_v46 }
 0x644   :  { %1672 = vrcp.f32 %v1014_v23 }
 0x64b   :  { %v1669_v38 = vpop.eup %1668 }
 0x64c   :  { %v1023_v52 = vmul.f32 %v1669_v38, %v1665_v56  ;;  %v1671_v22 = vpop.eup %1670 }
 0x64d   :  { %v1022_v24 = vmul.f32 %v1671_v22, %v2227_v53  ;;  %v1730_v53 = vld [vmem:[#allocation2 + $0xa0] ss:$16 sps:$4 sm:$0xff]  }
 0x64e   :  { %v1673_v26 = vpop.eup %1672 }
 0x64f   :  { %v2310_v25 = vadd.f32 %v1023_v52, %v1022_v24 }
 0x651   :  { %1674 = vtanh.f32 %v2310_v25 }
 0x65b   :  { %v1675_v28 = vpop.eup %1674 }
 0x65c   :  { %v1026_v29 = vmul.f32 %v1675_v28, %v1673_v26 }
 0x65e   :  { %v1039_v30 = vpack.c.bf16 %v1026_v29, %v1026_v29  ;;  %v1273_v29 = vld [vmem:[#allocation4] sm:$0xff] }
 0x660   :  { %1073 = vmatmul.mubr.bf16.vlgmr.msra.gmra.mrb[24].mxu0 %v1039_v30  ;;  %1114 = vmatmul.mubr.bf16.vlgmr.msra.gmra.mrb[24].mxu1 %v1039_v30  ;;  %v1274_v30 = vld [vmem:[#allocation4 + $0x8] sm:$0xff] }
 0x661   :  { %1164 = vmatpush1.bf16.msra.mxu0 %v2230_v49  ;;  %1205 = vmatpush1.bf16.msra.mxu1 %v2233_v3  ;;  %v1731_v49 = vld [vmem:[#allocation2 + $0xa8] ss:$16 sps:$4 sm:$0xff]   ;;  %v1732_v3 = vld [vmem:[#allocation2 + $0xc4] ss:$16 sps:$4 sm:$0xff]  }
 0x662   :  { %1165 = vmatprep.subr.bf16.mxu0 %v2236_v61  ;;  %1206 = vmatprep.subr.bf16.mxu1 %v2239_v4  ;;  %v1733_v61 = vld [vmem:[#allocation2 + $0xcc] ss:$16 sps:$4 sm:$0xff]   ;;  %v1734_v4 = vld [vmem:[#allocation2 + $0xc0] ss:$16 sps:$4 sm:$0xff]  }
 0x663   :  { %1195 = vmatprep.mubr.bf16.mxu0 %v2376_v0  ;;  %1236 = vmatprep.mubr.bf16.mxu1 %v2376_v0  ;;  %v1729_v0 = vld [vmem:[#allocation2 + $0xac] ss:$16 sps:$4 sm:$0xff]  }
 0x665   :  { %1166 = vmatpush1.bf16.msra.mxu0 %v2244_v5  ;;  %1207 = vmatpush1.bf16.msra.mxu1 %v2247_v6  ;;  %v1735_v5 = vld [vmem:[#allocation2 + $0xc8] ss:$16 sps:$4 sm:$0xff]   ;;  %v1736_v6 = vld [vmem:[#allocation2 + $0xe4] ss:$16 sps:$4 sm:$0xff]  }
 0x666   :  { %1167 = vmatprep.subr.bf16.mxu0 %v2250_v7  ;;  %1208 = vmatprep.subr.bf16.mxu1 %v2253_v8  ;;  %v1737_v7 = vld [vmem:[#allocation2 + $0xec] ss:$16 sps:$4 sm:$0xff]   ;;  %v1738_v8 = vld [vmem:[#allocation2 + $0xe0] ss:$16 sps:$4 sm:$0xff]  }
 0x669   :  { %1168 = vmatpush1.bf16.msra.mxu0 %v2256_v9  ;;  %1209 = vmatpush1.bf16.msra.mxu1 %v2259_v10  ;;  %v1739_v9 = vld [vmem:[#allocation2 + $0xe8] ss:$16 sps:$4 sm:$0xff]   ;;  %v1802_v10 = vmov 7  }
 0x66a   :  { %1169 = vmatprep.subr.bf16.mxu0 %v2262_v11  ;;  %1210 = vmatprep.subr.bf16.mxu1 %v2265_v1  ;;  %v1740_v11 = vld [vmem:[%s2364_s0] sm:$0xff]  ;;  %v1029_v1 = vpop.permute.xlu1 %1028 }
 0x66b   :  { %1530 = vset.pattern.permute.xlu1 %v1802_v10  ;;  %1531 = vset.pattern.permute.xlu0 %v1802_v10  ;;  %v1033_v31 = vmul.f32 %v1029_v1, %v2378_v12  ;;  %v1034_v42 = vmul.f32 %v1029_v1, %v2029_v55  ;;  %v1282_v10 = vld [vmem:[#allocation4 + $0x48] sm:$0xff] }
 0x66c   :  { %1151 = vperm.xlu1 %1530, %v1740_v11  }
 0x66d   :  { %1170 = vmatpush1.bf16.msra.mxu0 %v2268_v13  ;;  %1211 = vmatpush1.bf16.msra.mxu1 %v2271_v2  ;;  %v1031_v13 = vmul.f32 %v1029_v1, %v2012_v40  ;;  %v1032_v2 = vmul.f32 %v1029_v1, %v2017_v43  ;;  %v1037_v51 = vadd.f32 %v1033_v31, %v2032_v58  ;;  %v1283_v1 = vld [vmem:[#allocation4 + $0x50] sm:$0xff]  ;;  %v1288_v31 = vld [vmem:[#allocation4 + $0x78] sm:$0xff] }
 0x66e   :  { %1171 = vmatprep.subr.bf16.mxu0 %v2274_v14  ;;  %1212 = vmatprep.subr.bf16.mxu1 %v2277_v15  ;;  %v1038_v54 = vadd.f32 %v1034_v42, %v2035_v44 }
 0x66f   :  { %v1035_v14 = vadd.f32 %v1031_v13, %v2020_v45  ;;  %v1036_v15 = vadd.f32 %v1032_v2, %v2023_v48  ;;  %v1284_v13 = vld [vmem:[#allocation4 + $0x58] sm:$0xff] }
 0x670   :  { %v1498_v2 = vpack.c.bf16 %v1284_v13, %v1283_v1 }
 0x671   :  { %1172 = vmatpush1.bf16.msra.mxu0 %v2280_v16  ;;  %1213 = vmatpush1.bf16.msra.mxu1 %v2283_v17 }
 0x672   :  { %1173 = vmatprep.subr.bf16.mxu0 %v2286_v18  ;;  %1214 = vmatprep.subr.bf16.mxu1 %v1729_v0  ;;  %v1483_v0 = vpack.c.bf16 %v1274_v30, %v1273_v29 }
 0x675   :  { %1174 = vmatpush1.bf16.msra.mxu0 %v1730_v53  ;;  %1215 = vmatpush1.bf16.msra.mxu1 %v1731_v49  ;;  %v1803_v53 = vmov 0.0|0.0   ;;  %v1275_v49 = vld [vmem:[#allocation4 + $0x10] sm:$0xff] }
 0x676   :  { %1175 = vmatprep.subr.bf16.mxu0 %v1732_v3  ;;  %1216 = vmatprep.subr.bf16.mxu1 %v1733_v61  ;;  %v1277_v61 = vld [vmem:[#allocation4 + $0x20] sm:$0xff] }
 0x679   :  { %1176 = vmatpush1.bf16.msra.mxu0 %v1734_v4  ;;  %1217 = vmatpush1.bf16.msra.mxu1 %v1735_v5  ;;  %v1278_v4 = vld [vmem:[#allocation4 + $0x28] sm:$0xff] }
 0x67a   :  { %1177 = vmatprep.subr.bf16.mxu0 %v1736_v6  ;;  %1218 = vmatprep.subr.bf16.mxu1 %v1737_v7  ;;  %v1489_v5 = vpack.c.bf16 %v1278_v4, %v1277_v61  ;;  %v1279_v6 = vld [vmem:[#allocation4 + $0x30] sm:$0xff]  ;;  %v1280_v7 = vld [vmem:[#allocation4 + $0x38] sm:$0xff] }
 0x67d   :  { %1178 = vmatpush1.bf16.msra.mxu0 %v1738_v8  ;;  %1219 = vmatpush1.bf16.msra.mxu1 %v1739_v9  ;;  %v1492_v8 = vpack.c.bf16 %v1280_v7, %v1279_v6  ;;  %v1281_v9 = vld [vmem:[#allocation4 + $0x40] sm:$0xff] }
 0x67e   :  { %1482 = vmatprep.subr.bf16.mxu0 %v1803_v53  ;;  %v1495_v11 = vpack.c.bf16 %v1282_v10, %v1281_v9 }
 0x733   :  { %v1074_v16 = vpop.f32.mrb[24].mxu0  ;;  %v1115_v17 = vpop.f32.mrb[24].mxu1 }
 0x734   :  { %v1122_v18 = vadd.f32 %v1074_v16, %v1035_v14  ;;  %v1076_v32 = vpop.f32.mrb[25].mxu0  ;;  %v1117_v33 = vpop.f32.mrb[25].mxu1  ;;  %v1124_v60 = vadd.f32 %v1115_v17, %v1037_v51  ;;  %v1285_v14 = vld [vmem:[#allocation4 + $0x60] sm:$0xff]  ;;  %v1805_v16 = vmov 0.0  }
 0x735   :  { %v1123_v19 = vadd.f32 %v1076_v32, %v1036_v15  ;;  %v1078_v20 = vpop.f32.mrb[26].mxu0  ;;  %v1119_v21 = vpop.f32.mrb[26].mxu1  ;;  %v1125_v35 = vadd.f32 %v1117_v33, %v1038_v54  ;;  %v1286_v15 = vld [vmem:[#allocation4 + $0x68] sm:$0xff] }
 0x736   :  { %v1423_v57 = vmul.f32 -1.442695, %v1122_v18  ;;  %v1079_v47 = vpop.f32.mrb[27].mxu0  ;;  %v1120_v59 = vpop.f32.mrb[27].mxu1  ;;  %v1425_v39 = vmul.f32 -1.442695, %v1124_v60  ;;  %v1501_v17 = vpack.c.bf16 %v1286_v15, %v1285_v14 }
 0x737   :  { %v1424_v27 = vmul.f32 -1.442695, %v1123_v19  ;;  %v1287_v18 = vld [vmem:[#allocation4 + $0x70] sm:$0xff]  ;;  %v1152_v33 = vpop.permute.xlu1 %1151 }
 0x738   :  { %1676 = vpow2.f32 %v1423_v57  ;;  %v1504_v32 = vpack.c.bf16 %v1288_v31, %v1287_v18  ;;  %v1154_v19 = vmul.f32 %v1152_v33, %v2012_v40  ;;  %v1155_v20 = vmul.f32 %v1152_v33, %v2017_v43 }
 0x739   :  { %1678 = vpow2.f32 %v1424_v27  ;;  %v1156_v27 = vmul.f32 %v1152_v33, %v2378_v12  ;;  %v1157_v40 = vmul.f32 %v1152_v33, %v2029_v55 }
 0x73a   :  { %1680 = vtanh.f32 %v1125_v35  ;;  %v1158_v21 = vadd.f32 %v1154_v19, %v2020_v45  ;;  %v1159_v57 = vadd.f32 %v1155_v20, %v2023_v48 }
 0x73b   :  { %1682 = vpow2.f32 %v1425_v39  ;;  %v1160_v45 = vadd.f32 %v1156_v27, %v2032_v58  ;;  %v1161_v48 = vadd.f32 %v1157_v40, %v2035_v44 }
 0x742   :  { %v1677_v37 = vpop.eup %1676 }
 0x743   :  { %v1135_v50 = vadd.f32 1.0, %v1677_v37  ;;  %v1679_v41 = vpop.eup %1678 }
 0x744   :  { %v1136_v36 = vadd.f32 1.0, %v1679_v41  ;;  %v1681_v34 = vpop.eup %1680 }
 0x745   :  { %1684 = vrcp.f32 %v1135_v50  ;;  %v1683_v62 = vpop.eup %1682 }
 0x746   :  { %1686 = vrcp.f32 %v1136_v36  ;;  %v1137_v38 = vadd.f32 1.0, %v1683_v62 }
 0x748   :  { %1688 = vrcp.f32 %v1137_v38 }
 0x74f   :  { %v1685_v63 = vpop.eup %1684 }
 0x750   :  { %v1146_v56 = vmul.f32 %v1685_v63, %v1681_v34  ;;  %v1687_v46 = vpop.eup %1686 }
 0x751   :  { %v1145_v52 = vmul.f32 %v1687_v46, %v2310_v25  ;;  %v1276_v25 = vld [vmem:[#allocation4 + $0x18] sm:$0xff] }
 0x752   :  { %v1689_v23 = vpop.eup %1688  ;;  %v1486_v3 = vpack.c.bf16 %v1276_v25, %v1275_v49 }
 0x753   :  { %v2346_v22 = vadd.f32 %v1146_v56, %v1145_v52 }
 0x755   :  { %1690 = vtanh.f32 %v2346_v22 }
 0x75f   :  { %v1691_v24 = vpop.eup %1690 }
 0x760   :  { %v1149_v26 = vmul.f32 %v1691_v24, %v1689_v23 }
 0x762   :  { %v1162_v28 = vpack.c.bf16 %v1149_v26, %v1149_v26 }
 0x764   :  { %1196 = vmatmul.mubr.bf16.vlgmr.msra.gmra.mrb[28].mxu0 %v1162_v28  ;;  %1237 = vmatmul.mubr.bf16.vlgmr.msra.gmra.mrb[28].mxu1 %v1162_v28 }
 0x765   :  { %1484 = vmatpush3.bf16.msra.mxu0 %v1483_v0  ;;  %1479 = vmatprep.mubr.msk.f32.mxu0 %vm1804_vm0, %v1805_v16  ;;  %v1429_v0 = vld [vmem:[%s2369_s5] ss:$0 sm:$0xff] }
 0x766   :  { %1485 = vmatprep.subr.bf16.mxu0 %v1803_v53 }
 0x769   :  { %1487 = vmatpush3.bf16.msra.mxu0 %v1486_v3 }
 0x76a   :  { %1488 = vmatprep.subr.bf16.mxu0 %v1803_v53 }
 0x76d   :  { %1490 = vmatpush3.bf16.msra.mxu0 %v1489_v5 }
 0x76e   :  { %1491 = vmatprep.subr.bf16.mxu0 %v1803_v53 }
 0x771   :  { %1493 = vmatpush3.bf16.msra.mxu0 %v1492_v8 }
 0x772   :  { %1494 = vmatprep.subr.bf16.mxu0 %v1803_v53 }
 0x775   :  { %1496 = vmatpush3.bf16.msra.mxu0 %v1495_v11 }
 0x776   :  { %1497 = vmatprep.subr.bf16.mxu0 %v1803_v53 }
 0x779   :  { %1499 = vmatpush3.bf16.msra.mxu0 %v1498_v2 }
 0x77a   :  { %1500 = vmatprep.subr.bf16.mxu0 %v1803_v53 }
 0x77d   :  { %1502 = vmatpush3.bf16.msra.mxu0 %v1501_v17 }
 0x77e   :  { %1503 = vmatprep.subr.bf16.mxu0 %v1803_v53 }
 0x781   :  { %1505 = vmatpush3.bf16.msra.mxu0 %v1504_v32 }
 0x837   :  { %v1197_v47 = vpop.f32.mrb[28].mxu0  ;;  %v1238_v59 = vpop.f32.mrb[28].mxu1 }
 0x838   :  { %v1245_v42 = vadd.f32 %v1197_v47, %v1158_v21  ;;  %v1199_v51 = vpop.f32.mrb[29].mxu0  ;;  %v1240_v54 = vpop.f32.mrb[29].mxu1  ;;  %v1247_v36 = vadd.f32 %v1238_v59, %v1160_v45 }
 0x839   :  { %v1246_v60 = vadd.f32 %v1199_v51, %v1159_v57  ;;  %v1201_v35 = vpop.f32.mrb[30].mxu0  ;;  %v1242_v39 = vpop.f32.mrb[30].mxu1  ;;  %v1248_v12 = vadd.f32 %v1240_v54, %v1161_v48 }
 0x83a   :  { %v1426_v37 = vmul.f32 -1.442695, %v1245_v42  ;;  %v1202_v50 = vpop.f32.mrb[31].mxu0  ;;  %v1243_v41 = vpop.f32.mrb[31].mxu1  ;;  %v1428_v34 = vmul.f32 -1.442695, %v1247_v36 }
 0x83b   :  { %v1427_v43 = vmul.f32 -1.442695, %v1246_v60 }
 0x83c   :  { %1692 = vpow2.f32 %v1426_v37 }
 0x83d   :  { %1694 = vpow2.f32 %v1427_v43 }
 0x83e   :  { %1696 = vtanh.f32 %v1248_v12 }
 0x83f   :  { %1698 = vpow2.f32 %v1428_v34 }
 0x846   :  { %v1693_v62 = vpop.eup %1692 }
 0x847   :  { %v1258_v63 = vadd.f32 1.0, %v1693_v62  ;;  %v1695_v56 = vpop.eup %1694 }
 0x848   :  { %v1259_v46 = vadd.f32 1.0, %v1695_v56  ;;  %v1697_v38 = vpop.eup %1696 }
 0x849   :  { %1700 = vrcp.f32 %v1258_v63  ;;  %v1699_v55 = vpop.eup %1698 }
 0x84a   :  { %1702 = vrcp.f32 %v1259_v46  ;;  %v1260_v58 = vadd.f32 1.0, %v1699_v55 }
 0x84c   :  { %1704 = vrcp.f32 %v1260_v58 }
 0x853   :  { %v1701_v52 = vpop.eup %1700 }
 0x854   :  { %v1269_v23 = vmul.f32 %v1701_v52, %v1697_v38  ;;  %v1703_v24 = vpop.eup %1702 }
 0x855   :  { %v1268_v26 = vmul.f32 %v1703_v24, %v2346_v22 }
 0x856   :  { %v1705_v28 = vpop.eup %1704 }
 0x857   :  { %v1270_v44 = vadd.f32 %v1269_v23, %v1268_v26 }
 0x859   :  { %1706 = vtanh.f32 %v1270_v44 }
 0x863   :  { %v1707_v29 = vpop.eup %1706 }
 0x864   :  { %v1272_v30 = vmul.f32 %v1707_v29, %v1705_v28 }
 0x866   :  { %1480 = vmatmul.mubr.f32.vlgmr.msra.gmra.mrb[32].mxu0 %v1272_v30 }
 0x939   :  { %v1362_v53 = vpop.f32.mrb[32].mxu0 }
 0x93a   :  { %v1363_v49 = vadd.f32 %v1429_v0, %v1362_v53  ;;  %v1481_v25 = vpop.f32.mrb[33].mxu0 }
 0x93c   :  { %1366 = vst [vmem:[%s2370_s6] sm:$0xff] %v1363_v49 }
 0x93d   :  { %1371 = vsyncpa [#allocation3], 1 }
 0x93e   :  { %1372 = vsyncpa [#allocation5], 1 }

</bundles_post_ra>
